<compile_context>
chip_gen: v5e
topology: v5e:2x2
jax: 0.10.0
libtpu: 0.0.40
codegen_flags: <defaults>
</compile_context>

<pallas_src>
import functools
import math

import jax
import jax.numpy as jnp
from jax import lax
from jax.experimental import pallas as pl
from jax.experimental.pallas import tpu as pltpu


def _attention_kernel(x_ref, wqkv_ref, bqkv_ref, wo_ref, bo_ref, gamma_ref, beta_ref,
                      o_ref, acc_ref, *, n_heads, head_dim, eps, compute_dtype,
                      approx_recip, unroll_heads):
    x_in = x_ref[0]                                # (S, D), caller dtype
    x_c = x_in.astype(compute_dtype)               # MXU operand dtype (bf16 fast path)
    x_f32 = x_in.astype(jnp.float32)               # residual / LayerNorm path

    # Accumulator starts at residual + output-projection bias; every head then adds its
    # ctx_h @ Wo[h] contribution. Only full-width (lane-dense) stores touch VMEM.
    acc_ref[...] = x_f32 + bo_ref[...]

    def head_body(h, carry):
        # Per-head fused QKV projection: contraction over full D (MXU-deep), output
        # width 3*head_dim. The softmax scale is already folded into Wq/bq.
        qkv_h = jnp.dot(x_c, wqkv_ref[h], preferred_element_type=jnp.float32)
        qkv_h = qkv_h + bqkv_ref[h]                # (S, 3*head_dim) f32
        qh = qkv_h[:, :head_dim].astype(compute_dtype)
        kh = qkv_h[:, head_dim:2 * head_dim].astype(compute_dtype)
        vh = qkv_h[:, 2 * head_dim:].astype(compute_dtype)

        # q @ k^T via dot_general contracting the last axes (no transposed copy of k).
        scores = lax.dot_general(qh, kh, (((1,), (1,)), ((), ())),
                                 preferred_element_type=jnp.float32)      # (S, S) f32
        scores = scores - jnp.max(scores, axis=-1, keepdims=True)
        p = jnp.exp(scores)                                               # unnormalized
        denom = jnp.sum(p, axis=-1, keepdims=True)                        # (S, 1)

        # Deferred softmax normalization: normalize the (S, head_dim) context, not the
        # (S, S) probs tile. p <= 1 after max-subtraction so the bf16 cast is safe.
        ctx = jnp.dot(p.astype(compute_dtype), vh,
                      preferred_element_type=jnp.float32)                 # (S, hd) f32
        ctx = ctx * pl.reciprocal(denom, approx=approx_recip)

        # Per-head slice of the output projection, accumulated full-width.
        acc_ref[...] += jnp.dot(ctx.astype(compute_dtype), wo_ref[h],
                                preferred_element_type=jnp.float32)
        return carry

    lax.fori_loop(0, n_heads, head_body, 0, unroll=unroll_heads)

    # Residual + LayerNorm (biased variance, eps=1e-5), one-pass statistics, f32.
    y = acc_ref[...]
    mean = jnp.mean(y, axis=-1, keepdims=True)
    var = jnp.maximum(jnp.mean(y * y, axis=-1, keepdims=True) - mean * mean, 0.0)
    normed = (y - mean) * lax.rsqrt(var + eps)
    o_ref[0] = (normed * gamma_ref[...] + beta_ref[...]).astype(o_ref.dtype)


def attention_layer(x, params, *, n_heads, compute_dtype=jnp.bfloat16):
    """x: (B, S, D). params: dict of weights (see init_params).

    compute_dtype: dtype of MXU matmul operands (accumulation is always f32).
    bf16 is the fast path on v5e/v6e/v7x; float32 gives a tight numerics baseline
    (exact reciprocal, exact matmuls).
    """
    B, S, D = x.shape
    assert D % n_heads == 0, "d_model must be divisible by n_heads"
    head_dim = D // n_heads
    scale = 1.0 / math.sqrt(head_dim)

    def per_head_cols(w):          # (D, D) -> (n_heads, D, head_dim): column blocks
        return w.reshape(D, n_heads, head_dim).transpose(1, 0, 2)

    def per_head_bias(b):          # (1, D) -> (n_heads, 1, head_dim)
        return b.reshape(1, n_heads, head_dim).transpose(1, 0, 2)

    # Fold the softmax scale into Q weights/bias in f32 BEFORE the compute-dtype cast.
    wqkv = jnp.concatenate([per_head_cols(params["wq"] * scale),
                            per_head_cols(params["wk"]),
                            per_head_cols(params["wv"])], axis=2).astype(compute_dtype)
    bqkv = jnp.concatenate([per_head_bias(params["bq"] * scale),
                            per_head_bias(params["bk"]),
                            per_head_bias(params["bv"])], axis=2).astype(jnp.float32)
    wo = params["wo"].reshape(n_heads, head_dim, D).astype(compute_dtype)  # row blocks
    bo = params["bo"].astype(jnp.float32)
    gamma = params["gamma"].astype(jnp.float32)
    beta = params["beta"].astype(jnp.float32)

    approx_recip = jnp.dtype(compute_dtype) != jnp.dtype(jnp.float32)
    kernel = functools.partial(
        _attention_kernel, n_heads=n_heads, head_dim=head_dim, eps=1e-5,
        compute_dtype=compute_dtype, approx_recip=approx_recip,
        unroll_heads=(n_heads <= 8))

    xbytes = jnp.dtype(x.dtype).itemsize
    wbytes = jnp.dtype(compute_dtype).itemsize

    # Real per-grid-step footprint + modest headroom, clamped per TPU generation.
    est_vmem = (
        2 * S * D * xbytes          # x block, double-buffered
        + 2 * S * D * xbytes        # out block, double-buffered
        + 2 * 4 * D * D * wbytes    # wqkv (3*D*D) + wo (D*D), double-buffered
        + 16 * D * 4                # biases / gamma / beta
        + S * D * 4                 # acc scratch (f32)
        + S * D * wbytes            # compute-dtype copy of x (loop-invariant)
        + 2 * S * S * 4             # one head's live scores / probs tile (f32)
        + 4 * S * 3 * head_dim * 4  # per-head qkv / ctx intermediates
        + (4 << 20)                 # pipelining / spill headroom
    )
    try:
        vmem_cap = int(pltpu.get_tpu_info().vmem_capacity_bytes)
    except Exception:
        vmem_cap = 64 * 1024 * 1024   # unknown part -> assume the smallest (v7x, 64 MiB)
    vmem_limit = int(min(max(est_vmem, 32 * 1024 * 1024), int(vmem_cap * 0.8)))

    cost = pl.CostEstimate(
        flops=int(8 * B * S * D * D + 4 * B * S * S * D),
        transcendentals=int(B * n_heads * S * S),
        bytes_accessed=int(2 * B * S * D * xbytes + 4 * D * D * wbytes + 16 * D * 4),
    )

    grid_spec = pltpu.PrefetchScalarGridSpec(
        num_scalar_prefetch=0,
        grid=(B,),
        in_specs=[
            pl.BlockSpec((1, S, D), lambda b: (b, 0, 0)),                    # x
            pl.BlockSpec((n_heads, D, 3 * head_dim), lambda b: (0, 0, 0)),   # Wqkv per head
            pl.BlockSpec((n_heads, 1, 3 * head_dim), lambda b: (0, 0, 0)),   # bqkv per head
            pl.BlockSpec((n_heads, head_dim, D), lambda b: (0, 0, 0)),       # Wo per head
            pl.BlockSpec((1, D), lambda b: (0, 0)),                          # bo
            pl.BlockSpec((1, D), lambda b: (0, 0)),                          # gamma
            pl.BlockSpec((1, D), lambda b: (0, 0)),                          # beta
        ],
        out_specs=pl.BlockSpec((1, S, D), lambda b: (b, 0, 0)),
        scratch_shapes=[pltpu.VMEM((S, D), jnp.float32)],                    # out accumulator
    )

    fn = pl.pallas_call(
        kernel,
        out_shape=jax.ShapeDtypeStruct((B, S, D), x.dtype),
        grid_spec=grid_spec,
        compiler_params=pltpu.CompilerParams(
            dimension_semantics=("parallel",),
            vmem_limit_bytes=vmem_limit),
        cost_estimate=cost,
    )
    return fn(x, wqkv, bqkv, wo, bo, gamma, beta)


def init_params(key, d_model):
    """Deterministic synthetic parameters (shapes match nn.Linear / nn.LayerNorm).

    Weights stored as (D_in, D_out) = transpose of PyTorch's (out, in) layout.
    """
    ks = jax.random.split(key, 8)
    bound = 1.0 / math.sqrt(d_model)  # PyTorch Linear default init range

    def lin(kw, kb):
        w = jax.random.uniform(kw, (d_model, d_model), jnp.float32, -bound, bound)
        b = jax.random.uniform(kb, (1, d_model), jnp.float32, -bound, bound)
        return w, b

    wq, bq = lin(ks[0], ks[1])
    wk, bk = lin(ks[2], ks[3])
    wv, bv = lin(ks[4], ks[5])
    wo, bo = lin(ks[6], ks[7])
    return {
        "wq": wq, "bq": bq,
        "wk": wk, "bk": bk,
        "wv": wv, "bv": bv,
        "wo": wo, "bo": bo,
        "gamma": jnp.ones((1, d_model), jnp.float32),
        "beta": jnp.zeros((1, d_model), jnp.float32),
    }


def _reference(x, params, *, n_heads):
    """Pure-JAX f32 reference of the PyTorch forward (eval mode)."""
    B, S, D = x.shape
    hd = D // n_heads

    def proj(w, b):
        return x @ w + b  # (B, S, D)

    q = proj(params["wq"], params["bq"]).reshape(B, S, n_heads, hd).transpose(0, 2, 1, 3)
    k = proj(params["wk"], params["bk"]).reshape(B, S, n_heads, hd).transpose(0, 2, 1, 3)
    v = proj(params["wv"], params["bv"]).reshape(B, S, n_heads, hd).transpose(0, 2, 1, 3)

    scores = jnp.einsum("bhqd,bhkd->bhqk", q, k) / math.sqrt(hd)
    attn = jax.nn.softmax(scores, axis=-1)
    ctx = jnp.einsum("bhqk,bhkd->bhqd", attn, v)
    ctx = ctx.transpose(0, 2, 1, 3).reshape(B, S, D)
    out = ctx @ params["wo"] + params["bo"]

    y = x + out
    mean = jnp.mean(y, axis=-1, keepdims=True)
    var = jnp.mean((y - mean) ** 2, axis=-1, keepdims=True)
    return (y - mean) / jnp.sqrt(var + 1e-5) * params["gamma"] + params["beta"]


if __name__ == "__main__":
    B, S, D, H = 2, 8, 32, 8

    key = jax.random.PRNGKey(0)
    kx, kp = jax.random.split(key)
    x = jax.random.normal(kx, (B, S, D), dtype=jnp.float32)
    params = init_params(kp, D)

    ref = _reference(x, params, n_heads=H)

    # f32-operand path: exact reciprocal, exact matmuls -> tight numerics baseline.
    out_f32 = jax.block_until_ready(
        attention_layer(x, params, n_heads=H, compute_dtype=jnp.float32))
    assert out_f32.shape == (B, S, D)
    assert jnp.allclose(out_f32, ref, atol=5e-3, rtol=5e-3), "f32 path mismatch vs reference"

    # bf16 MXU-operand / f32-accumulation path (the v5e/v6e/v7x perf configuration).
    out_bf16 = jax.block_until_ready(
        attention_layer(x, params, n_heads=H, compute_dtype=jnp.bfloat16))
    assert out_bf16.shape == (B, S, D)
    assert jnp.allclose(out_bf16, ref, atol=1e-1, rtol=1e-1), "bf16 path mismatch vs reference"

    print("KERNEL_OK")
</pallas_src>

<mosaic_0001>
module attributes {stable_mosaic.version = 11 : i64} {
  func.func @_attention_kernel(%arg0: i32, %arg1: memref<1x8x32xf32, #tpu.memory_space<vmem>>, %arg2: memref<8x32x12xf32, #tpu.memory_space<vmem>>, %arg3: memref<8x1x12xf32, #tpu.memory_space<vmem>>, %arg4: memref<8x4x32xf32, #tpu.memory_space<vmem>>, %arg5: memref<1x32xf32, #tpu.memory_space<vmem>>, %arg6: memref<1x32xf32, #tpu.memory_space<vmem>>, %arg7: memref<1x32xf32, #tpu.memory_space<vmem>>, %arg8: memref<1x8x32xf32, #tpu.memory_space<vmem>>, %arg9: memref<8x32xf32, #tpu.memory_space<vmem>>) attributes {dimension_semantics = [#tpu.dimension_semantics<parallel>], iteration_bounds = array<i64: 2>, scalar_prefetch = 0 : i64, scratch_operands = 1 : i64, tpu.core_type = #tpu.core_type<tc>, window_params = [{transform_indices = @transform_0, window_bounds = array<i64: 1, 8, 32>}, {pipeline_mode = #tpu.pipeline_mode<synchronous>, transform_indices = @transform_1, window_bounds = array<i64: 8, 32, 12>}, {pipeline_mode = #tpu.pipeline_mode<synchronous>, transform_indices = @transform_2, window_bounds = array<i64: 8, 1, 12>}, {pipeline_mode = #tpu.pipeline_mode<synchronous>, transform_indices = @transform_3, window_bounds = array<i64: 8, 4, 32>}, {pipeline_mode = #tpu.pipeline_mode<synchronous>, transform_indices = @transform_4, window_bounds = array<i64: 1, 32>}, {pipeline_mode = #tpu.pipeline_mode<synchronous>, transform_indices = @transform_5, window_bounds = array<i64: 1, 32>}, {pipeline_mode = #tpu.pipeline_mode<synchronous>, transform_indices = @transform_6, window_bounds = array<i64: 1, 32>}, {transform_indices = @transform_7, window_bounds = array<i64: 1, 8, 32>}]} {
    %c0 = arith.constant 0 : index
    %c0_0 = arith.constant 0 : index
    %c0_1 = arith.constant 0 : index
    %0 = vector.load %arg1[%c0, %c0_0, %c0_1] : memref<1x8x32xf32, #tpu.memory_space<vmem>>, vector<1x8x32xf32>
    %1 = vector.shape_cast %0 : vector<1x8x32xf32> to vector<8x32xf32>
    %c0_2 = arith.constant 0 : index
    %c0_3 = arith.constant 0 : index
    %2 = vector.load %arg5[%c0_2, %c0_3] : memref<1x32xf32, #tpu.memory_space<vmem>>, vector<1x32xf32>
    %3 = vector.broadcast %2 : vector<1x32xf32> to vector<8x32xf32>
    %4 = arith.addf %1, %3 : vector<8x32xf32>
    %c0_4 = arith.constant 0 : index
    %c0_5 = arith.constant 0 : index
    %5 = vector.load %arg9[%c0_4, %c0_5] : memref<8x32xf32, #tpu.memory_space<vmem>>, vector<8x32xf32>
    tpu.vector_store %arg9[%c0_4, %c0_5], %4 {strides = array<i32>} : memref<8x32xf32, #tpu.memory_space<vmem>>, vector<8x32xf32>,
    %c0_i32 = arith.constant 0 : i32
    %6 = arith.index_cast %c0_i32 : i32 to index
    %c0_6 = arith.constant 0 : index
    %c0_7 = arith.constant 0 : index
    %7 = vector.load %arg2[%6, %c0_6, %c0_7] : memref<8x32x12xf32, #tpu.memory_space<vmem>>, vector<1x32x12xf32>
    %8 = vector.shape_cast %7 : vector<1x32x12xf32> to vector<32x12xf32>
    %cst = arith.constant dense<0.000000e+00> : vector<8x12xf32>
    %9 = tpu.matmul %1, %8, %cst {dimension_numbers = #tpu.dot_dimension_numbers<[1], [0], [0], [1], [0, 0, 1, 1], [], []>} : vector<8x32xf32>, vector<32x12xf32>, vector<8x12xf32> -> vector<8x12xf32>
    %10 = arith.index_cast %c0_i32 : i32 to index
    %c0_8 = arith.constant 0 : index
    %c0_9 = arith.constant 0 : index
    %11 = vector.load %arg3[%10, %c0_8, %c0_9] : memref<8x1x12xf32, #tpu.memory_space<vmem>>, vector<1x1x12xf32>
    %12 = vector.shape_cast %11 : vector<1x1x12xf32> to vector<1x12xf32>
    %13 = vector.broadcast %12 : vector<1x12xf32> to vector<8x12xf32>
    %14 = arith.addf %9, %13 : vector<8x12xf32>
    %15 = vector.extract_strided_slice %14 {offsets = [0, 0], sizes = [8, 4], strides = [1, 1]} : vector<8x12xf32> to vector<8x4xf32>
    %16 = vector.extract_strided_slice %14 {offsets = [0, 4], sizes = [8, 4], strides = [1, 1]} : vector<8x12xf32> to vector<8x4xf32>
    %17 = vector.extract_strided_slice %14 {offsets = [0, 8], sizes = [8, 4], strides = [1, 1]} : vector<8x12xf32> to vector<8x4xf32>
    %cst_10 = arith.constant dense<0.000000e+00> : vector<8x8xf32>
    %18 = tpu.matmul %15, %16, %cst_10 {dimension_numbers = #tpu.dot_dimension_numbers<[1], [1], [0], [0], [0, 0, 1, 0], [], []>} : vector<8x4xf32>, vector<8x4xf32>, vector<8x8xf32> -> vector<8x8xf32>
    %cst_11 = arith.constant dense<0xFF800000> : vector<8xf32>
    %19 = vector.multi_reduction <maximumf>, %18, %cst_11 [1] : vector<8x8xf32> to vector<8xf32>
    %20 = vector.shape_cast %19 : vector<8xf32> to vector<8x1xf32>
    %21 = vector.broadcast %20 : vector<8x1xf32> to vector<8x8xf32>
    %22 = arith.subf %18, %21 : vector<8x8xf32>
    %23 = math.exp %22 : vector<8x8xf32>
    %cst_12 = arith.constant dense<0.000000e+00> : vector<8xf32>
    %24 = vector.multi_reduction <add>, %23, %cst_12 [1] : vector<8x8xf32> to vector<8xf32>
    %25 = vector.shape_cast %24 : vector<8xf32> to vector<8x1xf32>
    %cst_13 = arith.constant dense<0.000000e+00> : vector<8x4xf32>
    %26 = tpu.matmul %23, %17, %cst_13 {dimension_numbers = #tpu.dot_dimension_numbers<[1], [0], [0], [1], [0, 0, 1, 1], [], []>} : vector<8x8xf32>, vector<8x4xf32>, vector<8x4xf32> -> vector<8x4xf32>
    %27 = tpu.reciprocal %25 : vector<8x1xf32> -> vector<8x1xf32>
    %28 = vector.broadcast %27 : vector<8x1xf32> to vector<8x4xf32>
    %29 = arith.mulf %26, %28 : vector<8x4xf32>
    %c0_14 = arith.constant 0 : index
    %c0_15 = arith.constant 0 : index
    %30 = vector.load %arg9[%c0_14, %c0_15] : memref<8x32xf32, #tpu.memory_space<vmem>>, vector<8x32xf32>
    %31 = arith.index_cast %c0_i32 : i32 to index
    %c0_16 = arith.constant 0 : index
    %c0_17 = arith.constant 0 : index
    %32 = vector.load %arg4[%31, %c0_16, %c0_17] : memref<8x4x32xf32, #tpu.memory_space<vmem>>, vector<1x4x32xf32>
    %33 = vector.shape_cast %32 : vector<1x4x32xf32> to vector<4x32xf32>
    %cst_18 = arith.constant dense<0.000000e+00> : vector<8x32xf32>
    %34 = tpu.matmul %29, %33, %cst_18 {dimension_numbers = #tpu.dot_dimension_numbers<[1], [0], [0], [1], [0, 0, 1, 1], [], []>} : vector<8x4xf32>, vector<4x32xf32>, vector<8x32xf32> -> vector<8x32xf32>
    %35 = arith.addf %30, %34 : vector<8x32xf32>
    %c0_19 = arith.constant 0 : index
    %c0_20 = arith.constant 0 : index
    %36 = vector.load %arg9[%c0_19, %c0_20] : memref<8x32xf32, #tpu.memory_space<vmem>>, vector<8x32xf32>
    tpu.vector_store %arg9[%c0_19, %c0_20], %35 {strides = array<i32>} : memref<8x32xf32, #tpu.memory_space<vmem>>, vector<8x32xf32>,
    %c1_i32 = arith.constant 1 : i32
    %37 = arith.index_cast %c1_i32 : i32 to index
    %c0_21 = arith.constant 0 : index
    %c0_22 = arith.constant 0 : index
    %38 = vector.load %arg2[%37, %c0_21, %c0_22] : memref<8x32x12xf32, #tpu.memory_space<vmem>>, vector<1x32x12xf32>
    %39 = vector.shape_cast %38 : vector<1x32x12xf32> to vector<32x12xf32>
    %cst_23 = arith.constant dense<0.000000e+00> : vector<8x12xf32>
    %40 = tpu.matmul %1, %39, %cst_23 {dimension_numbers = #tpu.dot_dimension_numbers<[1], [0], [0], [1], [0, 0, 1, 1], [], []>} : vector<8x32xf32>, vector<32x12xf32>, vector<8x12xf32> -> vector<8x12xf32>
    %41 = arith.index_cast %c1_i32 : i32 to index
    %c0_24 = arith.constant 0 : index
    %c0_25 = arith.constant 0 : index
    %42 = vector.load %arg3[%41, %c0_24, %c0_25] : memref<8x1x12xf32, #tpu.memory_space<vmem>>, vector<1x1x12xf32>
    %43 = vector.shape_cast %42 : vector<1x1x12xf32> to vector<1x12xf32>
    %44 = vector.broadcast %43 : vector<1x12xf32> to vector<8x12xf32>
    %45 = arith.addf %40, %44 : vector<8x12xf32>
    %46 = vector.extract_strided_slice %45 {offsets = [0, 0], sizes = [8, 4], strides = [1, 1]} : vector<8x12xf32> to vector<8x4xf32>
    %47 = vector.extract_strided_slice %45 {offsets = [0, 4], sizes = [8, 4], strides = [1, 1]} : vector<8x12xf32> to vector<8x4xf32>
    %48 = vector.extract_strided_slice %45 {offsets = [0, 8], sizes = [8, 4], strides = [1, 1]} : vector<8x12xf32> to vector<8x4xf32>
    %cst_26 = arith.constant dense<0.000000e+00> : vector<8x8xf32>
    %49 = tpu.matmul %46, %47, %cst_26 {dimension_numbers = #tpu.dot_dimension_numbers<[1], [1], [0], [0], [0, 0, 1, 0], [], []>} : vector<8x4xf32>, vector<8x4xf32>, vector<8x8xf32> -> vector<8x8xf32>
    %cst_27 = arith.constant dense<0xFF800000> : vector<8xf32>
    %50 = vector.multi_reduction <maximumf>, %49, %cst_27 [1] : vector<8x8xf32> to vector<8xf32>
    %51 = vector.shape_cast %50 : vector<8xf32> to vector<8x1xf32>
    %52 = vector.broadcast %51 : vector<8x1xf32> to vector<8x8xf32>
    %53 = arith.subf %49, %52 : vector<8x8xf32>
    %54 = math.exp %53 : vector<8x8xf32>
    %cst_28 = arith.constant dense<0.000000e+00> : vector<8xf32>
    %55 = vector.multi_reduction <add>, %54, %cst_28 [1] : vector<8x8xf32> to vector<8xf32>
    %56 = vector.shape_cast %55 : vector<8xf32> to vector<8x1xf32>
    %cst_29 = arith.constant dense<0.000000e+00> : vector<8x4xf32>
    %57 = tpu.matmul %54, %48, %cst_29 {dimension_numbers = #tpu.dot_dimension_numbers<[1], [0], [0], [1], [0, 0, 1, 1], [], []>} : vector<8x8xf32>, vector<8x4xf32>, vector<8x4xf32> -> vector<8x4xf32>
    %58 = tpu.reciprocal %56 : vector<8x1xf32> -> vector<8x1xf32>
    %59 = vector.broadcast %58 : vector<8x1xf32> to vector<8x4xf32>
    %60 = arith.mulf %57, %59 : vector<8x4xf32>
    %c0_30 = arith.constant 0 : index
    %c0_31 = arith.constant 0 : index
    %61 = vector.load %arg9[%c0_30, %c0_31] : memref<8x32xf32, #tpu.memory_space<vmem>>, vector<8x32xf32>
    %62 = arith.index_cast %c1_i32 : i32 to index
    %c0_32 = arith.constant 0 : index
    %c0_33 = arith.constant 0 : index
    %63 = vector.load %arg4[%62, %c0_32, %c0_33] : memref<8x4x32xf32, #tpu.memory_space<vmem>>, vector<1x4x32xf32>
    %64 = vector.shape_cast %63 : vector<1x4x32xf32> to vector<4x32xf32>
    %cst_34 = arith.constant dense<0.000000e+00> : vector<8x32xf32>
    %65 = tpu.matmul %60, %64, %cst_34 {dimension_numbers = #tpu.dot_dimension_numbers<[1], [0], [0], [1], [0, 0, 1, 1], [], []>} : vector<8x4xf32>, vector<4x32xf32>, vector<8x32xf32> -> vector<8x32xf32>
    %66 = arith.addf %61, %65 : vector<8x32xf32>
    %c0_35 = arith.constant 0 : index
    %c0_36 = arith.constant 0 : index
    %67 = vector.load %arg9[%c0_35, %c0_36] : memref<8x32xf32, #tpu.memory_space<vmem>>, vector<8x32xf32>
    tpu.vector_store %arg9[%c0_35, %c0_36], %66 {strides = array<i32>} : memref<8x32xf32, #tpu.memory_space<vmem>>, vector<8x32xf32>,
    %c2_i32 = arith.constant 2 : i32
    %68 = arith.index_cast %c2_i32 : i32 to index
    %c0_37 = arith.constant 0 : index
    %c0_38 = arith.constant 0 : index
    %69 = vector.load %arg2[%68, %c0_37, %c0_38] : memref<8x32x12xf32, #tpu.memory_space<vmem>>, vector<1x32x12xf32>
    %70 = vector.shape_cast %69 : vector<1x32x12xf32> to vector<32x12xf32>
    %cst_39 = arith.constant dense<0.000000e+00> : vector<8x12xf32>
    %71 = tpu.matmul %1, %70, %cst_39 {dimension_numbers = #tpu.dot_dimension_numbers<[1], [0], [0], [1], [0, 0, 1, 1], [], []>} : vector<8x32xf32>, vector<32x12xf32>, vector<8x12xf32> -> vector<8x12xf32>
    %72 = arith.index_cast %c2_i32 : i32 to index
    %c0_40 = arith.constant 0 : index
    %c0_41 = arith.constant 0 : index
    %73 = vector.load %arg3[%72, %c0_40, %c0_41] : memref<8x1x12xf32, #tpu.memory_space<vmem>>, vector<1x1x12xf32>
    %74 = vector.shape_cast %73 : vector<1x1x12xf32> to vector<1x12xf32>
    %75 = vector.broadcast %74 : vector<1x12xf32> to vector<8x12xf32>
    %76 = arith.addf %71, %75 : vector<8x12xf32>
    %77 = vector.extract_strided_slice %76 {offsets = [0, 0], sizes = [8, 4], strides = [1, 1]} : vector<8x12xf32> to vector<8x4xf32>
    %78 = vector.extract_strided_slice %76 {offsets = [0, 4], sizes = [8, 4], strides = [1, 1]} : vector<8x12xf32> to vector<8x4xf32>
    %79 = vector.extract_strided_slice %76 {offsets = [0, 8], sizes = [8, 4], strides = [1, 1]} : vector<8x12xf32> to vector<8x4xf32>
    %cst_42 = arith.constant dense<0.000000e+00> : vector<8x8xf32>
    %80 = tpu.matmul %77, %78, %cst_42 {dimension_numbers = #tpu.dot_dimension_numbers<[1], [1], [0], [0], [0, 0, 1, 0], [], []>} : vector<8x4xf32>, vector<8x4xf32>, vector<8x8xf32> -> vector<8x8xf32>
    %cst_43 = arith.constant dense<0xFF800000> : vector<8xf32>
    %81 = vector.multi_reduction <maximumf>, %80, %cst_43 [1] : vector<8x8xf32> to vector<8xf32>
    %82 = vector.shape_cast %81 : vector<8xf32> to vector<8x1xf32>
    %83 = vector.broadcast %82 : vector<8x1xf32> to vector<8x8xf32>
    %84 = arith.subf %80, %83 : vector<8x8xf32>
    %85 = math.exp %84 : vector<8x8xf32>
    %cst_44 = arith.constant dense<0.000000e+00> : vector<8xf32>
    %86 = vector.multi_reduction <add>, %85, %cst_44 [1] : vector<8x8xf32> to vector<8xf32>
    %87 = vector.shape_cast %86 : vector<8xf32> to vector<8x1xf32>
    %cst_45 = arith.constant dense<0.000000e+00> : vector<8x4xf32>
    %88 = tpu.matmul %85, %79, %cst_45 {dimension_numbers = #tpu.dot_dimension_numbers<[1], [0], [0], [1], [0, 0, 1, 1], [], []>} : vector<8x8xf32>, vector<8x4xf32>, vector<8x4xf32> -> vector<8x4xf32>
    %89 = tpu.reciprocal %87 : vector<8x1xf32> -> vector<8x1xf32>
    %90 = vector.broadcast %89 : vector<8x1xf32> to vector<8x4xf32>
    %91 = arith.mulf %88, %90 : vector<8x4xf32>
    %c0_46 = arith.constant 0 : index
    %c0_47 = arith.constant 0 : index
    %92 = vector.load %arg9[%c0_46, %c0_47] : memref<8x32xf32, #tpu.memory_space<vmem>>, vector<8x32xf32>
    %93 = arith.index_cast %c2_i32 : i32 to index
    %c0_48 = arith.constant 0 : index
    %c0_49 = arith.constant 0 : index
    %94 = vector.load %arg4[%93, %c0_48, %c0_49] : memref<8x4x32xf32, #tpu.memory_space<vmem>>, vector<1x4x32xf32>
    %95 = vector.shape_cast %94 : vector<1x4x32xf32> to vector<4x32xf32>
    %cst_50 = arith.constant dense<0.000000e+00> : vector<8x32xf32>
    %96 = tpu.matmul %91, %95, %cst_50 {dimension_numbers = #tpu.dot_dimension_numbers<[1], [0], [0], [1], [0, 0, 1, 1], [], []>} : vector<8x4xf32>, vector<4x32xf32>, vector<8x32xf32> -> vector<8x32xf32>
    %97 = arith.addf %92, %96 : vector<8x32xf32>
    %c0_51 = arith.constant 0 : index
    %c0_52 = arith.constant 0 : index
    %98 = vector.load %arg9[%c0_51, %c0_52] : memref<8x32xf32, #tpu.memory_space<vmem>>, vector<8x32xf32>
    tpu.vector_store %arg9[%c0_51, %c0_52], %97 {strides = array<i32>} : memref<8x32xf32, #tpu.memory_space<vmem>>, vector<8x32xf32>,
    %c3_i32 = arith.constant 3 : i32
    %99 = arith.index_cast %c3_i32 : i32 to index
    %c0_53 = arith.constant 0 : index
    %c0_54 = arith.constant 0 : index
    %100 = vector.load %arg2[%99, %c0_53, %c0_54] : memref<8x32x12xf32, #tpu.memory_space<vmem>>, vector<1x32x12xf32>
    %101 = vector.shape_cast %100 : vector<1x32x12xf32> to vector<32x12xf32>
    %cst_55 = arith.constant dense<0.000000e+00> : vector<8x12xf32>
    %102 = tpu.matmul %1, %101, %cst_55 {dimension_numbers = #tpu.dot_dimension_numbers<[1], [0], [0], [1], [0, 0, 1, 1], [], []>} : vector<8x32xf32>, vector<32x12xf32>, vector<8x12xf32> -> vector<8x12xf32>
    %103 = arith.index_cast %c3_i32 : i32 to index
    %c0_56 = arith.constant 0 : index
    %c0_57 = arith.constant 0 : index
    %104 = vector.load %arg3[%103, %c0_56, %c0_57] : memref<8x1x12xf32, #tpu.memory_space<vmem>>, vector<1x1x12xf32>
    %105 = vector.shape_cast %104 : vector<1x1x12xf32> to vector<1x12xf32>
    %106 = vector.broadcast %105 : vector<1x12xf32> to vector<8x12xf32>
    %107 = arith.addf %102, %106 : vector<8x12xf32>
    %108 = vector.extract_strided_slice %107 {offsets = [0, 0], sizes = [8, 4], strides = [1, 1]} : vector<8x12xf32> to vector<8x4xf32>
    %109 = vector.extract_strided_slice %107 {offsets = [0, 4], sizes = [8, 4], strides = [1, 1]} : vector<8x12xf32> to vector<8x4xf32>
    %110 = vector.extract_strided_slice %107 {offsets = [0, 8], sizes = [8, 4], strides = [1, 1]} : vector<8x12xf32> to vector<8x4xf32>
    %cst_58 = arith.constant dense<0.000000e+00> : vector<8x8xf32>
    %111 = tpu.matmul %108, %109, %cst_58 {dimension_numbers = #tpu.dot_dimension_numbers<[1], [1], [0], [0], [0, 0, 1, 0], [], []>} : vector<8x4xf32>, vector<8x4xf32>, vector<8x8xf32> -> vector<8x8xf32>
    %cst_59 = arith.constant dense<0xFF800000> : vector<8xf32>
    %112 = vector.multi_reduction <maximumf>, %111, %cst_59 [1] : vector<8x8xf32> to vector<8xf32>
    %113 = vector.shape_cast %112 : vector<8xf32> to vector<8x1xf32>
    %114 = vector.broadcast %113 : vector<8x1xf32> to vector<8x8xf32>
    %115 = arith.subf %111, %114 : vector<8x8xf32>
    %116 = math.exp %115 : vector<8x8xf32>
    %cst_60 = arith.constant dense<0.000000e+00> : vector<8xf32>
    %117 = vector.multi_reduction <add>, %116, %cst_60 [1] : vector<8x8xf32> to vector<8xf32>
    %118 = vector.shape_cast %117 : vector<8xf32> to vector<8x1xf32>
    %cst_61 = arith.constant dense<0.000000e+00> : vector<8x4xf32>
    %119 = tpu.matmul %116, %110, %cst_61 {dimension_numbers = #tpu.dot_dimension_numbers<[1], [0], [0], [1], [0, 0, 1, 1], [], []>} : vector<8x8xf32>, vector<8x4xf32>, vector<8x4xf32> -> vector<8x4xf32>
    %120 = tpu.reciprocal %118 : vector<8x1xf32> -> vector<8x1xf32>
    %121 = vector.broadcast %120 : vector<8x1xf32> to vector<8x4xf32>
    %122 = arith.mulf %119, %121 : vector<8x4xf32>
    %c0_62 = arith.constant 0 : index
    %c0_63 = arith.constant 0 : index
    %123 = vector.load %arg9[%c0_62, %c0_63] : memref<8x32xf32, #tpu.memory_space<vmem>>, vector<8x32xf32>
    %124 = arith.index_cast %c3_i32 : i32 to index
    %c0_64 = arith.constant 0 : index
    %c0_65 = arith.constant 0 : index
    %125 = vector.load %arg4[%124, %c0_64, %c0_65] : memref<8x4x32xf32, #tpu.memory_space<vmem>>, vector<1x4x32xf32>
    %126 = vector.shape_cast %125 : vector<1x4x32xf32> to vector<4x32xf32>
    %cst_66 = arith.constant dense<0.000000e+00> : vector<8x32xf32>
    %127 = tpu.matmul %122, %126, %cst_66 {dimension_numbers = #tpu.dot_dimension_numbers<[1], [0], [0], [1], [0, 0, 1, 1], [], []>} : vector<8x4xf32>, vector<4x32xf32>, vector<8x32xf32> -> vector<8x32xf32>
    %128 = arith.addf %123, %127 : vector<8x32xf32>
    %c0_67 = arith.constant 0 : index
    %c0_68 = arith.constant 0 : index
    %129 = vector.load %arg9[%c0_67, %c0_68] : memref<8x32xf32, #tpu.memory_space<vmem>>, vector<8x32xf32>
    tpu.vector_store %arg9[%c0_67, %c0_68], %128 {strides = array<i32>} : memref<8x32xf32, #tpu.memory_space<vmem>>, vector<8x32xf32>,
    %c4_i32 = arith.constant 4 : i32
    %130 = arith.index_cast %c4_i32 : i32 to index
    %c0_69 = arith.constant 0 : index
    %c0_70 = arith.constant 0 : index
    %131 = vector.load %arg2[%130, %c0_69, %c0_70] : memref<8x32x12xf32, #tpu.memory_space<vmem>>, vector<1x32x12xf32>
    %132 = vector.shape_cast %131 : vector<1x32x12xf32> to vector<32x12xf32>
    %cst_71 = arith.constant dense<0.000000e+00> : vector<8x12xf32>
    %133 = tpu.matmul %1, %132, %cst_71 {dimension_numbers = #tpu.dot_dimension_numbers<[1], [0], [0], [1], [0, 0, 1, 1], [], []>} : vector<8x32xf32>, vector<32x12xf32>, vector<8x12xf32> -> vector<8x12xf32>
    %134 = arith.index_cast %c4_i32 : i32 to index
    %c0_72 = arith.constant 0 : index
    %c0_73 = arith.constant 0 : index
    %135 = vector.load %arg3[%134, %c0_72, %c0_73] : memref<8x1x12xf32, #tpu.memory_space<vmem>>, vector<1x1x12xf32>
    %136 = vector.shape_cast %135 : vector<1x1x12xf32> to vector<1x12xf32>
    %137 = vector.broadcast %136 : vector<1x12xf32> to vector<8x12xf32>
    %138 = arith.addf %133, %137 : vector<8x12xf32>
    %139 = vector.extract_strided_slice %138 {offsets = [0, 0], sizes = [8, 4], strides = [1, 1]} : vector<8x12xf32> to vector<8x4xf32>
    %140 = vector.extract_strided_slice %138 {offsets = [0, 4], sizes = [8, 4], strides = [1, 1]} : vector<8x12xf32> to vector<8x4xf32>
    %141 = vector.extract_strided_slice %138 {offsets = [0, 8], sizes = [8, 4], strides = [1, 1]} : vector<8x12xf32> to vector<8x4xf32>
    %cst_74 = arith.constant dense<0.000000e+00> : vector<8x8xf32>
    %142 = tpu.matmul %139, %140, %cst_74 {dimension_numbers = #tpu.dot_dimension_numbers<[1], [1], [0], [0], [0, 0, 1, 0], [], []>} : vector<8x4xf32>, vector<8x4xf32>, vector<8x8xf32> -> vector<8x8xf32>
    %cst_75 = arith.constant dense<0xFF800000> : vector<8xf32>
    %143 = vector.multi_reduction <maximumf>, %142, %cst_75 [1] : vector<8x8xf32> to vector<8xf32>
    %144 = vector.shape_cast %143 : vector<8xf32> to vector<8x1xf32>
    %145 = vector.broadcast %144 : vector<8x1xf32> to vector<8x8xf32>
    %146 = arith.subf %142, %145 : vector<8x8xf32>
    %147 = math.exp %146 : vector<8x8xf32>
    %cst_76 = arith.constant dense<0.000000e+00> : vector<8xf32>
    %148 = vector.multi_reduction <add>, %147, %cst_76 [1] : vector<8x8xf32> to vector<8xf32>
    %149 = vector.shape_cast %148 : vector<8xf32> to vector<8x1xf32>
    %cst_77 = arith.constant dense<0.000000e+00> : vector<8x4xf32>
    %150 = tpu.matmul %147, %141, %cst_77 {dimension_numbers = #tpu.dot_dimension_numbers<[1], [0], [0], [1], [0, 0, 1, 1], [], []>} : vector<8x8xf32>, vector<8x4xf32>, vector<8x4xf32> -> vector<8x4xf32>
    %151 = tpu.reciprocal %149 : vector<8x1xf32> -> vector<8x1xf32>
    %152 = vector.broadcast %151 : vector<8x1xf32> to vector<8x4xf32>
    %153 = arith.mulf %150, %152 : vector<8x4xf32>
    %c0_78 = arith.constant 0 : index
    %c0_79 = arith.constant 0 : index
    %154 = vector.load %arg9[%c0_78, %c0_79] : memref<8x32xf32, #tpu.memory_space<vmem>>, vector<8x32xf32>
    %155 = arith.index_cast %c4_i32 : i32 to index
    %c0_80 = arith.constant 0 : index
    %c0_81 = arith.constant 0 : index
    %156 = vector.load %arg4[%155, %c0_80, %c0_81] : memref<8x4x32xf32, #tpu.memory_space<vmem>>, vector<1x4x32xf32>
    %157 = vector.shape_cast %156 : vector<1x4x32xf32> to vector<4x32xf32>
    %cst_82 = arith.constant dense<0.000000e+00> : vector<8x32xf32>
    %158 = tpu.matmul %153, %157, %cst_82 {dimension_numbers = #tpu.dot_dimension_numbers<[1], [0], [0], [1], [0, 0, 1, 1], [], []>} : vector<8x4xf32>, vector<4x32xf32>, vector<8x32xf32> -> vector<8x32xf32>
    %159 = arith.addf %154, %158 : vector<8x32xf32>
    %c0_83 = arith.constant 0 : index
    %c0_84 = arith.constant 0 : index
    %160 = vector.load %arg9[%c0_83, %c0_84] : memref<8x32xf32, #tpu.memory_space<vmem>>, vector<8x32xf32>
    tpu.vector_store %arg9[%c0_83, %c0_84], %159 {strides = array<i32>} : memref<8x32xf32, #tpu.memory_space<vmem>>, vector<8x32xf32>,
    %c5_i32 = arith.constant 5 : i32
    %161 = arith.index_cast %c5_i32 : i32 to index
    %c0_85 = arith.constant 0 : index
    %c0_86 = arith.constant 0 : index
    %162 = vector.load %arg2[%161, %c0_85, %c0_86] : memref<8x32x12xf32, #tpu.memory_space<vmem>>, vector<1x32x12xf32>
    %163 = vector.shape_cast %162 : vector<1x32x12xf32> to vector<32x12xf32>
    %cst_87 = arith.constant dense<0.000000e+00> : vector<8x12xf32>
    %164 = tpu.matmul %1, %163, %cst_87 {dimension_numbers = #tpu.dot_dimension_numbers<[1], [0], [0], [1], [0, 0, 1, 1], [], []>} : vector<8x32xf32>, vector<32x12xf32>, vector<8x12xf32> -> vector<8x12xf32>
    %165 = arith.index_cast %c5_i32 : i32 to index
    %c0_88 = arith.constant 0 : index
    %c0_89 = arith.constant 0 : index
    %166 = vector.load %arg3[%165, %c0_88, %c0_89] : memref<8x1x12xf32, #tpu.memory_space<vmem>>, vector<1x1x12xf32>
    %167 = vector.shape_cast %166 : vector<1x1x12xf32> to vector<1x12xf32>
    %168 = vector.broadcast %167 : vector<1x12xf32> to vector<8x12xf32>
    %169 = arith.addf %164, %168 : vector<8x12xf32>
    %170 = vector.extract_strided_slice %169 {offsets = [0, 0], sizes = [8, 4], strides = [1, 1]} : vector<8x12xf32> to vector<8x4xf32>
    %171 = vector.extract_strided_slice %169 {offsets = [0, 4], sizes = [8, 4], strides = [1, 1]} : vector<8x12xf32> to vector<8x4xf32>
    %172 = vector.extract_strided_slice %169 {offsets = [0, 8], sizes = [8, 4], strides = [1, 1]} : vector<8x12xf32> to vector<8x4xf32>
    %cst_90 = arith.constant dense<0.000000e+00> : vector<8x8xf32>
    %173 = tpu.matmul %170, %171, %cst_90 {dimension_numbers = #tpu.dot_dimension_numbers<[1], [1], [0], [0], [0, 0, 1, 0], [], []>} : vector<8x4xf32>, vector<8x4xf32>, vector<8x8xf32> -> vector<8x8xf32>
    %cst_91 = arith.constant dense<0xFF800000> : vector<8xf32>
    %174 = vector.multi_reduction <maximumf>, %173, %cst_91 [1] : vector<8x8xf32> to vector<8xf32>
    %175 = vector.shape_cast %174 : vector<8xf32> to vector<8x1xf32>
    %176 = vector.broadcast %175 : vector<8x1xf32> to vector<8x8xf32>
    %177 = arith.subf %173, %176 : vector<8x8xf32>
    %178 = math.exp %177 : vector<8x8xf32>
    %cst_92 = arith.constant dense<0.000000e+00> : vector<8xf32>
    %179 = vector.multi_reduction <add>, %178, %cst_92 [1] : vector<8x8xf32> to vector<8xf32>
    %180 = vector.shape_cast %179 : vector<8xf32> to vector<8x1xf32>
    %cst_93 = arith.constant dense<0.000000e+00> : vector<8x4xf32>
    %181 = tpu.matmul %178, %172, %cst_93 {dimension_numbers = #tpu.dot_dimension_numbers<[1], [0], [0], [1], [0, 0, 1, 1], [], []>} : vector<8x8xf32>, vector<8x4xf32>, vector<8x4xf32> -> vector<8x4xf32>
    %182 = tpu.reciprocal %180 : vector<8x1xf32> -> vector<8x1xf32>
    %183 = vector.broadcast %182 : vector<8x1xf32> to vector<8x4xf32>
    %184 = arith.mulf %181, %183 : vector<8x4xf32>
    %c0_94 = arith.constant 0 : index
    %c0_95 = arith.constant 0 : index
    %185 = vector.load %arg9[%c0_94, %c0_95] : memref<8x32xf32, #tpu.memory_space<vmem>>, vector<8x32xf32>
    %186 = arith.index_cast %c5_i32 : i32 to index
    %c0_96 = arith.constant 0 : index
    %c0_97 = arith.constant 0 : index
    %187 = vector.load %arg4[%186, %c0_96, %c0_97] : memref<8x4x32xf32, #tpu.memory_space<vmem>>, vector<1x4x32xf32>
    %188 = vector.shape_cast %187 : vector<1x4x32xf32> to vector<4x32xf32>
    %cst_98 = arith.constant dense<0.000000e+00> : vector<8x32xf32>
    %189 = tpu.matmul %184, %188, %cst_98 {dimension_numbers = #tpu.dot_dimension_numbers<[1], [0], [0], [1], [0, 0, 1, 1], [], []>} : vector<8x4xf32>, vector<4x32xf32>, vector<8x32xf32> -> vector<8x32xf32>
    %190 = arith.addf %185, %189 : vector<8x32xf32>
    %c0_99 = arith.constant 0 : index
    %c0_100 = arith.constant 0 : index
    %191 = vector.load %arg9[%c0_99, %c0_100] : memref<8x32xf32, #tpu.memory_space<vmem>>, vector<8x32xf32>
    tpu.vector_store %arg9[%c0_99, %c0_100], %190 {strides = array<i32>} : memref<8x32xf32, #tpu.memory_space<vmem>>, vector<8x32xf32>,
    %c6_i32 = arith.constant 6 : i32
    %192 = arith.index_cast %c6_i32 : i32 to index
    %c0_101 = arith.constant 0 : index
    %c0_102 = arith.constant 0 : index
    %193 = vector.load %arg2[%192, %c0_101, %c0_102] : memref<8x32x12xf32, #tpu.memory_space<vmem>>, vector<1x32x12xf32>
    %194 = vector.shape_cast %193 : vector<1x32x12xf32> to vector<32x12xf32>
    %cst_103 = arith.constant dense<0.000000e+00> : vector<8x12xf32>
    %195 = tpu.matmul %1, %194, %cst_103 {dimension_numbers = #tpu.dot_dimension_numbers<[1], [0], [0], [1], [0, 0, 1, 1], [], []>} : vector<8x32xf32>, vector<32x12xf32>, vector<8x12xf32> -> vector<8x12xf32>
    %196 = arith.index_cast %c6_i32 : i32 to index
    %c0_104 = arith.constant 0 : index
    %c0_105 = arith.constant 0 : index
    %197 = vector.load %arg3[%196, %c0_104, %c0_105] : memref<8x1x12xf32, #tpu.memory_space<vmem>>, vector<1x1x12xf32>
    %198 = vector.shape_cast %197 : vector<1x1x12xf32> to vector<1x12xf32>
    %199 = vector.broadcast %198 : vector<1x12xf32> to vector<8x12xf32>
    %200 = arith.addf %195, %199 : vector<8x12xf32>
    %201 = vector.extract_strided_slice %200 {offsets = [0, 0], sizes = [8, 4], strides = [1, 1]} : vector<8x12xf32> to vector<8x4xf32>
    %202 = vector.extract_strided_slice %200 {offsets = [0, 4], sizes = [8, 4], strides = [1, 1]} : vector<8x12xf32> to vector<8x4xf32>
    %203 = vector.extract_strided_slice %200 {offsets = [0, 8], sizes = [8, 4], strides = [1, 1]} : vector<8x12xf32> to vector<8x4xf32>
    %cst_106 = arith.constant dense<0.000000e+00> : vector<8x8xf32>
    %204 = tpu.matmul %201, %202, %cst_106 {dimension_numbers = #tpu.dot_dimension_numbers<[1], [1], [0], [0], [0, 0, 1, 0], [], []>} : vector<8x4xf32>, vector<8x4xf32>, vector<8x8xf32> -> vector<8x8xf32>
    %cst_107 = arith.constant dense<0xFF800000> : vector<8xf32>
    %205 = vector.multi_reduction <maximumf>, %204, %cst_107 [1] : vector<8x8xf32> to vector<8xf32>
    %206 = vector.shape_cast %205 : vector<8xf32> to vector<8x1xf32>
    %207 = vector.broadcast %206 : vector<8x1xf32> to vector<8x8xf32>
    %208 = arith.subf %204, %207 : vector<8x8xf32>
    %209 = math.exp %208 : vector<8x8xf32>
    %cst_108 = arith.constant dense<0.000000e+00> : vector<8xf32>
    %210 = vector.multi_reduction <add>, %209, %cst_108 [1] : vector<8x8xf32> to vector<8xf32>
    %211 = vector.shape_cast %210 : vector<8xf32> to vector<8x1xf32>
    %cst_109 = arith.constant dense<0.000000e+00> : vector<8x4xf32>
    %212 = tpu.matmul %209, %203, %cst_109 {dimension_numbers = #tpu.dot_dimension_numbers<[1], [0], [0], [1], [0, 0, 1, 1], [], []>} : vector<8x8xf32>, vector<8x4xf32>, vector<8x4xf32> -> vector<8x4xf32>
    %213 = tpu.reciprocal %211 : vector<8x1xf32> -> vector<8x1xf32>
    %214 = vector.broadcast %213 : vector<8x1xf32> to vector<8x4xf32>
    %215 = arith.mulf %212, %214 : vector<8x4xf32>
    %c0_110 = arith.constant 0 : index
    %c0_111 = arith.constant 0 : index
    %216 = vector.load %arg9[%c0_110, %c0_111] : memref<8x32xf32, #tpu.memory_space<vmem>>, vector<8x32xf32>
    %217 = arith.index_cast %c6_i32 : i32 to index
    %c0_112 = arith.constant 0 : index
    %c0_113 = arith.constant 0 : index
    %218 = vector.load %arg4[%217, %c0_112, %c0_113] : memref<8x4x32xf32, #tpu.memory_space<vmem>>, vector<1x4x32xf32>
    %219 = vector.shape_cast %218 : vector<1x4x32xf32> to vector<4x32xf32>
    %cst_114 = arith.constant dense<0.000000e+00> : vector<8x32xf32>
    %220 = tpu.matmul %215, %219, %cst_114 {dimension_numbers = #tpu.dot_dimension_numbers<[1], [0], [0], [1], [0, 0, 1, 1], [], []>} : vector<8x4xf32>, vector<4x32xf32>, vector<8x32xf32> -> vector<8x32xf32>
    %221 = arith.addf %216, %220 : vector<8x32xf32>
    %c0_115 = arith.constant 0 : index
    %c0_116 = arith.constant 0 : index
    %222 = vector.load %arg9[%c0_115, %c0_116] : memref<8x32xf32, #tpu.memory_space<vmem>>, vector<8x32xf32>
    tpu.vector_store %arg9[%c0_115, %c0_116], %221 {strides = array<i32>} : memref<8x32xf32, #tpu.memory_space<vmem>>, vector<8x32xf32>,
    %c7_i32 = arith.constant 7 : i32
    %223 = arith.index_cast %c7_i32 : i32 to index
    %c0_117 = arith.constant 0 : index
    %c0_118 = arith.constant 0 : index
    %224 = vector.load %arg2[%223, %c0_117, %c0_118] : memref<8x32x12xf32, #tpu.memory_space<vmem>>, vector<1x32x12xf32>
    %225 = vector.shape_cast %224 : vector<1x32x12xf32> to vector<32x12xf32>
    %cst_119 = arith.constant dense<0.000000e+00> : vector<8x12xf32>
    %226 = tpu.matmul %1, %225, %cst_119 {dimension_numbers = #tpu.dot_dimension_numbers<[1], [0], [0], [1], [0, 0, 1, 1], [], []>} : vector<8x32xf32>, vector<32x12xf32>, vector<8x12xf32> -> vector<8x12xf32>
    %227 = arith.index_cast %c7_i32 : i32 to index
    %c0_120 = arith.constant 0 : index
    %c0_121 = arith.constant 0 : index
    %228 = vector.load %arg3[%227, %c0_120, %c0_121] : memref<8x1x12xf32, #tpu.memory_space<vmem>>, vector<1x1x12xf32>
    %229 = vector.shape_cast %228 : vector<1x1x12xf32> to vector<1x12xf32>
    %230 = vector.broadcast %229 : vector<1x12xf32> to vector<8x12xf32>
    %231 = arith.addf %226, %230 : vector<8x12xf32>
    %232 = vector.extract_strided_slice %231 {offsets = [0, 0], sizes = [8, 4], strides = [1, 1]} : vector<8x12xf32> to vector<8x4xf32>
    %233 = vector.extract_strided_slice %231 {offsets = [0, 4], sizes = [8, 4], strides = [1, 1]} : vector<8x12xf32> to vector<8x4xf32>
    %234 = vector.extract_strided_slice %231 {offsets = [0, 8], sizes = [8, 4], strides = [1, 1]} : vector<8x12xf32> to vector<8x4xf32>
    %cst_122 = arith.constant dense<0.000000e+00> : vector<8x8xf32>
    %235 = tpu.matmul %232, %233, %cst_122 {dimension_numbers = #tpu.dot_dimension_numbers<[1], [1], [0], [0], [0, 0, 1, 0], [], []>} : vector<8x4xf32>, vector<8x4xf32>, vector<8x8xf32> -> vector<8x8xf32>
    %cst_123 = arith.constant dense<0xFF800000> : vector<8xf32>
    %236 = vector.multi_reduction <maximumf>, %235, %cst_123 [1] : vector<8x8xf32> to vector<8xf32>
    %237 = vector.shape_cast %236 : vector<8xf32> to vector<8x1xf32>
    %238 = vector.broadcast %237 : vector<8x1xf32> to vector<8x8xf32>
    %239 = arith.subf %235, %238 : vector<8x8xf32>
    %240 = math.exp %239 : vector<8x8xf32>
    %cst_124 = arith.constant dense<0.000000e+00> : vector<8xf32>
    %241 = vector.multi_reduction <add>, %240, %cst_124 [1] : vector<8x8xf32> to vector<8xf32>
    %242 = vector.shape_cast %241 : vector<8xf32> to vector<8x1xf32>
    %cst_125 = arith.constant dense<0.000000e+00> : vector<8x4xf32>
    %243 = tpu.matmul %240, %234, %cst_125 {dimension_numbers = #tpu.dot_dimension_numbers<[1], [0], [0], [1], [0, 0, 1, 1], [], []>} : vector<8x8xf32>, vector<8x4xf32>, vector<8x4xf32> -> vector<8x4xf32>
    %244 = tpu.reciprocal %242 : vector<8x1xf32> -> vector<8x1xf32>
    %245 = vector.broadcast %244 : vector<8x1xf32> to vector<8x4xf32>
    %246 = arith.mulf %243, %245 : vector<8x4xf32>
    %c0_126 = arith.constant 0 : index
    %c0_127 = arith.constant 0 : index
    %247 = vector.load %arg9[%c0_126, %c0_127] : memref<8x32xf32, #tpu.memory_space<vmem>>, vector<8x32xf32>
    %248 = arith.index_cast %c7_i32 : i32 to index
    %c0_128 = arith.constant 0 : index
    %c0_129 = arith.constant 0 : index
    %249 = vector.load %arg4[%248, %c0_128, %c0_129] : memref<8x4x32xf32, #tpu.memory_space<vmem>>, vector<1x4x32xf32>
    %250 = vector.shape_cast %249 : vector<1x4x32xf32> to vector<4x32xf32>
    %cst_130 = arith.constant dense<0.000000e+00> : vector<8x32xf32>
    %251 = tpu.matmul %246, %250, %cst_130 {dimension_numbers = #tpu.dot_dimension_numbers<[1], [0], [0], [1], [0, 0, 1, 1], [], []>} : vector<8x4xf32>, vector<4x32xf32>, vector<8x32xf32> -> vector<8x32xf32>
    %252 = arith.addf %247, %251 : vector<8x32xf32>
    %c0_131 = arith.constant 0 : index
    %c0_132 = arith.constant 0 : index
    %253 = vector.load %arg9[%c0_131, %c0_132] : memref<8x32xf32, #tpu.memory_space<vmem>>, vector<8x32xf32>
    tpu.vector_store %arg9[%c0_131, %c0_132], %252 {strides = array<i32>} : memref<8x32xf32, #tpu.memory_space<vmem>>, vector<8x32xf32>,
    %c8_i32 = arith.constant 8 : i32
    %c0_133 = arith.constant 0 : index
    %c0_134 = arith.constant 0 : index
    %254 = vector.load %arg9[%c0_133, %c0_134] : memref<8x32xf32, #tpu.memory_space<vmem>>, vector<8x32xf32>
    %cst_135 = arith.constant dense<0.000000e+00> : vector<8xf32>
    %255 = vector.multi_reduction <add>, %254, %cst_135 [1] : vector<8x32xf32> to vector<8xf32>
    %256 = vector.shape_cast %255 : vector<8xf32> to vector<8x1xf32>
    %cst_136 = arith.constant 3.200000e+01 : f32
    %257 = vector.broadcast %cst_136 : f32 to vector<8x1xf32>
    %258 = arith.divf %256, %257 : vector<8x1xf32>
    %259 = arith.mulf %254, %254 : vector<8x32xf32>
    %cst_137 = arith.constant dense<0.000000e+00> : vector<8xf32>
    %260 = vector.multi_reduction <add>, %259, %cst_137 [1] : vector<8x32xf32> to vector<8xf32>
    %261 = vector.shape_cast %260 : vector<8xf32> to vector<8x1xf32>
    %cst_138 = arith.constant 3.200000e+01 : f32
    %262 = vector.broadcast %cst_138 : f32 to vector<8x1xf32>
    %263 = arith.divf %261, %262 : vector<8x1xf32>
    %264 = arith.mulf %258, %258 : vector<8x1xf32>
    %265 = arith.subf %263, %264 : vector<8x1xf32>
    %cst_139 = arith.constant 0.000000e+00 : f32
    %266 = vector.broadcast %cst_139 : f32 to vector<8x1xf32>
    %267 = arith.maximumf %265, %266 : vector<8x1xf32>
    %268 = vector.broadcast %258 : vector<8x1xf32> to vector<8x32xf32>
    %269 = arith.subf %254, %268 : vector<8x32xf32>
    %cst_140 = arith.constant 9.99999974E-6 : f32
    %270 = vector.broadcast %cst_140 : f32 to vector<8x1xf32>
    %271 = arith.addf %267, %270 : vector<8x1xf32>
    %272 = math.rsqrt %271 : vector<8x1xf32>
    %273 = vector.broadcast %272 : vector<8x1xf32> to vector<8x32xf32>
    %274 = arith.mulf %269, %273 : vector<8x32xf32>
    %c0_141 = arith.constant 0 : index
    %c0_142 = arith.constant 0 : index
    %275 = vector.load %arg6[%c0_141, %c0_142] : memref<1x32xf32, #tpu.memory_space<vmem>>, vector<1x32xf32>
    %276 = vector.broadcast %275 : vector<1x32xf32> to vector<8x32xf32>
    %277 = arith.mulf %274, %276 : vector<8x32xf32>
    %c0_143 = arith.constant 0 : index
    %c0_144 = arith.constant 0 : index
    %278 = vector.load %arg7[%c0_143, %c0_144] : memref<1x32xf32, #tpu.memory_space<vmem>>, vector<1x32xf32>
    %279 = vector.broadcast %278 : vector<1x32xf32> to vector<8x32xf32>
    %280 = arith.addf %277, %279 : vector<8x32xf32>
    %c0_145 = arith.constant 0 : index
    %c0_146 = arith.constant 0 : index
    %c0_147 = arith.constant 0 : index
    %281 = vector.load %arg8[%c0_145, %c0_146, %c0_147] : memref<1x8x32xf32, #tpu.memory_space<vmem>>, vector<1x8x32xf32>
    %282 = vector.shape_cast %281 : vector<1x8x32xf32> to vector<8x32xf32>
    %283 = vector.shape_cast %280 : vector<8x32xf32> to vector<1x8x32xf32>
    tpu.vector_store %arg8[%c0_145, %c0_146, %c0_147], %283 {strides = array<i32>} : memref<1x8x32xf32, #tpu.memory_space<vmem>>, vector<1x8x32xf32>,
    return
  }
  func.func @transform_0(%arg0: i32) -> (i32, i32, i32) {
    %c0_i32 = arith.constant 0 : i32
    %c0_i32_0 = arith.constant 0 : i32
    %c0_i32_1 = arith.constant 0 : i32
    return %arg0, %c0_i32, %c0_i32_0 : i32, i32, i32
  }
  func.func @transform_1(%arg0: i32) -> (i32, i32, i32) {
    %c0_i32 = arith.constant 0 : i32
    %c0_i32_0 = arith.constant 0 : i32
    %c0_i32_1 = arith.constant 0 : i32
    %c0_i32_2 = arith.constant 0 : i32
    return %c0_i32, %c0_i32_0, %c0_i32_1 : i32, i32, i32
  }
  func.func @transform_2(%arg0: i32) -> (i32, i32, i32) {
    %c0_i32 = arith.constant 0 : i32
    %c0_i32_0 = arith.constant 0 : i32
    %c0_i32_1 = arith.constant 0 : i32
    %c0_i32_2 = arith.constant 0 : i32
    return %c0_i32, %c0_i32_0, %c0_i32_1 : i32, i32, i32
  }
  func.func @transform_3(%arg0: i32) -> (i32, i32, i32) {
    %c0_i32 = arith.constant 0 : i32
    %c0_i32_0 = arith.constant 0 : i32
    %c0_i32_1 = arith.constant 0 : i32
    %c0_i32_2 = arith.constant 0 : i32
    return %c0_i32, %c0_i32_0, %c0_i32_1 : i32, i32, i32
  }
  func.func @transform_4(%arg0: i32) -> (i32, i32) {
    %c0_i32 = arith.constant 0 : i32
    %c0_i32_0 = arith.constant 0 : i32
    %c0_i32_1 = arith.constant 0 : i32
    return %c0_i32, %c0_i32_0 : i32, i32
  }
  func.func @transform_5(%arg0: i32) -> (i32, i32) {
    %c0_i32 = arith.constant 0 : i32
    %c0_i32_0 = arith.constant 0 : i32
    %c0_i32_1 = arith.constant 0 : i32
    return %c0_i32, %c0_i32_0 : i32, i32
  }
  func.func @transform_6(%arg0: i32) -> (i32, i32) {
    %c0_i32 = arith.constant 0 : i32
    %c0_i32_0 = arith.constant 0 : i32
    %c0_i32_1 = arith.constant 0 : i32
    return %c0_i32, %c0_i32_0 : i32, i32
  }
  func.func @transform_7(%arg0: i32) -> (i32, i32, i32) {
    %c0_i32 = arith.constant 0 : i32
    %c0_i32_0 = arith.constant 0 : i32
    %c0_i32_1 = arith.constant 0 : i32
    return %arg0, %c0_i32, %c0_i32_0 : i32, i32, i32
  }
}

</mosaic_0001>

<bundles_post_ra>
// kernel: tpu_custom_call.1
= control target key start
LH: loop header
LB: loop body
LE: loop exit
PB: predicated region body
PF: predicated region fallthrough
CT: control target
= control target key end

     0   :  { %12 = vsyncpa [#allocation4], 0  ;;  %s2158_s0 = inlined_call_operand.vmem [shape: f32[2,8,32], index: 0, kind: input, shape index: {}]   ;;  %s2159_s1 = inlined_call_operand.vmem [shape: f32[8,32,12], index: 1, kind: input, shape index: {}]   ;;  %s2160_s2 = inlined_call_operand.vmem [shape: f32[8,1,12], index: 2, kind: input, shape index: {}]   ;;  %s2161_s3 = inlined_call_operand.vmem [shape: f32[8,4,32], index: 3, kind: input, shape index: {}]   ;;  %s2162_s4 = inlined_call_operand.vmem [shape: f32[1,32], index: 4, kind: input, shape index: {}]   ;;  %s2163_s5 = inlined_call_operand.vmem [shape: f32[1,32], index: 5, kind: input, shape index: {}]   ;;  %s2164_s6 = inlined_call_operand.vmem [shape: f32[1,32], index: 6, kind: input, shape index: {}]   ;;  %s2165_s7 = inlined_call_operand.hbm [shape: f32[2,8,32], index: 7, kind: output, shape index: {}]  }
   0x1   :  { %14 = vsyncpa [#allocation4 + $0x1], 0  ;;  %s1814_s24 = smov 0   ;;  %s1816_s25 = smov 0  }
   0x2   :  { %s1818_s26 = smov 0   ;;  %s1820_s27 = smov 0  }
   0x3 LB: > { %s1835_s28 = sadd.s32 4294967295, %s1769_s27   ;;  %s1508_s29 = sadd.s32 4294967294, %s1769_s27   ;;  %s1769_s27 = sphi %s1820_s27, %s2171_s27   ;;  %s1765_s26 = sphi %s1818_s26, %s2170_s26   ;;  %s1761_s25 = sphi %s1816_s25, %s2169_s25   ;;  %s1757_s24 = sphi %s1814_s24, %s2168_s24  }
   0x4   : > { %s1839_s30 = sadd.s32 1, %s1769_s27   ;;  %s179_s8 = sadd.s32 1, %s1765_s26 }
   0x5   : > { %s176_s9 = ssub.s32 %s1769_s27, %s1839_s30  ;;  %p189_p0 = scmp.ne.s32.totalorder %s1765_s26, %s1761_s25 }
   0x6   : > { %p177_p1 = scmp.eq.s32.totalorder %s176_s9, 0  ;;  %p190_p2 = scmp.eq.s32.totalorder %s1835_s28, 1 }
   0x7   : > { %p195_p3 = scmp.ne.s32.totalorder %s1761_s25, %s1757_s24  ;;  %p196_p4 = scmp.eq.s32.totalorder %s1508_s29, 1 }
   0x8   : > { %s1850_s10 = scalar_select %p177_p1, %s1765_s26, %s179_s8  }
   0x9   : > { %p1852_p5 = por %p190_p2, %p189_p0  ;;  %p1856_p6 = por %p196_p4, %p195_p3 }
   0xa   : > { %p1511_p7 = scmp.ge.s32.totalorder %s1769_s27, 1  ;;  %p239_p8 = scmp.lt.s32.totalorder %s1769_s27, 3 }
   0xc   : > { %p240_p9 = pnand %p1511_p7, %p239_p8 }
   0xd   : > { %p270_p10 = scmp.lt.s32.totalorder (!%p240_p9), %s1835_s28, 1  ;;  %s1771_s14 = smov (!%p240_p9), 120  }
   0xe   : > { %243 = sbr.rel (%p240_p9) target bundleno = 1509 (0x5e5), region = 48  ;;  %s1772_s15 = smov (!%p240_p9), 124  }
   0xf   : > { %s1605_s18 = sshll.u32 (!%p240_p9), %s1835_s28, 3 }
  0x10   : > { %s1444_s23 = scalar_lea.hbm (!%p240_p9), %s2165_s7, %s1605_s18 }
  0x11   : > { %s1448_s13 = sshll.u32 (!%p240_p9), %s1444_s23, 4  ;;  %s1449_s13 = int_to_ptr.hbm [resolvable:$true] %s1448_s13 }
  0x12   : > { %s1721_s17 = sshra.s32 (!%p240_p9), %s1449_s13, 4  ;;  %s1722_s17 = int_to_ptr.hbm [resolvable:$true] %s1721_s17 }
  0x13   : > { %v285_v0 = vld [vmem:[%s2159_s1 + $0x18] sm:$0xff]  ;;  %v284_v1 = vld [vmem:[%s2159_s1 + $0x10] sm:$0xff]  ;;  %v283_v2 = vld [vmem:[%s2159_s1 + $0x8] sm:$0xff]  ;;  %s271_s19 = scalar_select %p270_p10, %s1835_s28, 1  ;;  %vm280_vm0 = vcmask 261120   ;;  %vm316_vm1 = vcmask 31744  }
  0x14   : > { %305 = vmatpush.msra.mxu0 %v285_v0  ;;  %v282_v3 = vld [vmem:[%s2159_s1] sm:$0xff]  ;;  %vm341_vm2 = vcmask 64512   ;;  %v1523_v12 = vld [vmem:[%s2159_s1 + $0x38] sm:$0xff]  ;;  %v1522_v13 = vld [vmem:[%s2159_s1 + $0x30] sm:$0xff]  ;;  %vm397_vm3 = vcmask 1043456   ;;  %s1723_s18 = scalar_lea.hbm %s1722_s17, 8  ;;  %p1728_p0 = scmp.lt.s32.totalorder %s1722_s17, %s2165_s7 }
  0x15   : > { %s1513_s22 = sshll.u32 %s271_s19, 3  ;;  %v1660_v5 = vld [vmem:[%s2160_s2] ss:$0 sm:$0xff]  ;;  %v1521_v14 = vld [vmem:[%s2159_s1 + $0x28] sm:$0xff]  ;;  %v1535_v19 = vld [vmem:[%s2159_s1 + $0x58] sm:$0xff]  ;;  %p1724_p11 = scmp.ne.s32.totalorder %s1722_s17, %s1723_s18 }
  0x16   : > { %306 = vmatpush.msra.mxu0 %v284_v1  ;;  %s273_s8 = scalar_lea.vmem %s2158_s0, %s1513_s22  ;;  %v1520_v15 = vld [vmem:[%s2159_s1 + $0x20] sm:$0xff]  ;;  %v1534_v22 = vld [vmem:[%s2159_s1 + $0x50] sm:$0xff]  ;;  %v1533_v23 = vld [vmem:[%s2159_s1 + $0x48] sm:$0xff] }
  0x17   : > { %v1879_v4 = vld [vmem:[%s273_s8] sm:$0xff]  ;;  %v1547_v25 = vld [vmem:[%s2159_s1 + $0x78] sm:$0xff]  ;;  %v1546_v26 = vld [vmem:[%s2159_s1 + $0x70] sm:$0xff]  ;;  %p1725_p12 = pnand %p1724_p11, %p1852_p5 }
  0x18   : > { %307 = vmatpush.msra.mxu0 %v283_v2  ;;  %v1532_v24 = vld [vmem:[%s2159_s1 + $0x40] sm:$0xff]  ;;  %v1545_v27 = vld [vmem:[%s2159_s1 + $0x68] sm:$0xff]  ;;  %v1559_v29 = vld [vmem:[%s2159_s1 + $0x98] sm:$0xff] }
  0x19   : > { %v1544_v28 = vld [vmem:[%s2159_s1 + $0x60] sm:$0xff]  ;;  %v1558_v30 = vld [vmem:[%s2159_s1 + $0x90] sm:$0xff]  ;;  %v1557_v31 = vld [vmem:[%s2159_s1 + $0x88] sm:$0xff]  ;;  %p1726_p13 = pneg %p1725_p12 }
  0x1a   : > { %308 = vmatpush.msra.mxu0 %v282_v3  ;;  %v1556_v32 = vld [vmem:[%s2159_s1 + $0x80] sm:$0xff]  ;;  %v1571_v33 = vld [vmem:[%s2159_s1 + $0xb8] sm:$0xff]  ;;  %v1570_v34 = vld [vmem:[%s2159_s1 + $0xb0] sm:$0xff] }
  0x1b   : > { %1514 = vmatmul.msk.f32.vlgmr.msra.gmra.mxu0 %vm280_vm0, %v1879_v4  ;;  %v1569_v35 = vld [vmem:[%s2159_s1 + $0xa8] sm:$0xff]  ;;  %v1568_v36 = vld [vmem:[%s2159_s1 + $0xa0] sm:$0xff]  ;;  %v1583_v37 = vld [vmem:[%s2159_s1 + $0xd8] sm:$0xff] }
  0x1c   : > { %v1582_v38 = vld [vmem:[%s2159_s1 + $0xd0] sm:$0xff]  ;;  %v1581_v39 = vld [vmem:[%s2159_s1 + $0xc8] sm:$0xff]  ;;  %v1580_v40 = vld [vmem:[%s2159_s1 + $0xc0] sm:$0xff] }
  0x1d   : > { %v1595_v41 = vld [vmem:[%s2159_s1 + $0xf8] sm:$0xff]  ;;  %v1594_v42 = vld [vmem:[%s2159_s1 + $0xf0] sm:$0xff]  ;;  %v1593_v43 = vld [vmem:[%s2159_s1 + $0xe8] sm:$0xff] }
  0x1e   : > { %v1592_v44 = vld [vmem:[%s2159_s1 + $0xe0] sm:$0xff] }
  0x1f   : > { %v393_v45 = vld [vmem:[%s2161_s3] sm:$0xf] }
  0x20   : > { %1518 = vmatpush.msk.msra.mxu3 %vm397_vm3, %v393_v45  ;;  %v1661_v59 = vld [vmem:[%s2160_s2 + $0x1] ss:$0 sm:$0xff]  ;;  %v1662_v62 = vld [vmem:[%s2160_s2 + $0x2] ss:$0 sm:$0xff]  ;;  %v1663_v1 = vld [vmem:[%s2160_s2 + $0x3] ss:$0 sm:$0xff] }
  0x98   : > { %v310_v6 = vpop.f32.mrf.mxu0 }
  0x99   : > { %v311_v7 = vadd.f32 %v1660_v5, %v310_v6  ;;  %v1664_v5 = vld [vmem:[%s2160_s2 + $0x4] ss:$0 sm:$0xff] }
  0x9b   : > { %351 = vrot.lane.b32.xlu1 %v311_v7, %s1771_s14  ;;  %314 = vrot.lane.b32.xlu0 %v311_v7, %s1772_s15 }
 0x10d   : > { %v352_v8 = vpop.permute.xlu1 %351  ;;  %v315_v9 = vpop.permute.xlu0 %314 }
 0x10e   : > { %1515 = vmatpush.xpose.msk.msra.mxu1 %vm316_vm1, %v315_v9  ;;  %372 = vmatpush.msra.mxu2 %v352_v8  ;;  %v1665_v8 = vld [vmem:[%s2160_s2 + $0x5] ss:$0 sm:$0xff] }
 0x110   : > { %445 = vmatpush.msrb.mxu2 %v1523_v12 }
 0x111   : > { %1516 = vmatmul.msk.f32.vlgmr.msra.gmra.mxu1 %vm316_vm1, %v311_v7 }
 0x112   : > { %446 = vmatpush.msrb.mxu2 %v1522_v13 }
 0x114   : > { %447 = vmatpush.msrb.mxu2 %v1521_v14  ;;  %v1667_v14 = vld [vmem:[%s2160_s2 + $0x7] ss:$0 sm:$0xff] }
 0x116   : > { %448 = vmatpush.msrb.mxu2 %v1520_v15 }
 0x18e   : > { %v338_v10 = vpop.f32.mrf.mxu1 }
 0x18f   : > { %v342_v11 = vsel %vm341_vm2, %v338_v10, -inf }
 0x190   : > { %343 = vmax.xlane.f32.xlu0 %v342_v11  ;;  %v1666_v11 = vld [vmem:[%s2160_s2 + $0x6] ss:$0 sm:$0xff] }
 0x203   : > { %v344_v16 = vpop.xlane.xlu0 %343 }
 0x204   : > { %v345_v17 = vsub.f32 %v338_v10, %v344_v16 }
 0x206   : > { %v346_v18 = vmul.f32 1.442695, %v345_v17 }
 0x208   : > { %1671 = vpow2.f32 %v346_v18 }
 0x20e   : > { %v1672_v20 = vpop.eup %1671 }
 0x20f   : > { %1517 = vmatmul.msk.f32.vlgmr.msra.gmra.mxu2 %vm341_vm2, %v1672_v20  ;;  %v348_v21 = vsel %vm341_vm2, %v1672_v20, 0.0 }
 0x210   : > { %349 = vadd.xlane.f32.xlu1 %v348_v21  ;;  %583 = vmatpush.msra.mxu2 %v1535_v19  ;;  %v1668_v19 = vld [vmem:[%s2162_s4] ss:$0 sm:$0xff] }
 0x211   : > { %v279_v20 = vadd.f32 %v1668_v19, %v1879_v4 }
 0x212   : > { %584 = vmatpush.msra.mxu2 %v1534_v22 }
 0x213   : > { %281 = vst.msk [vmem:[#allocation2] sm:$0xff] %vm280_vm0, %v279_v20 }
 0x214   : > { %585 = vmatpush.msra.mxu2 %v1533_v23 }
 0x216   : > { %586 = vmatpush.msra.mxu2 %v1532_v24 }
 0x217   : > { %1525 = vmatmul.msk.f32.vlgmr.msrb.gmra.mxu2 %vm280_vm0, %v1879_v4 }
 0x218   : > { %721 = vmatpush.msrb.mxu2 %v1547_v25 }
 0x21a   : > { %722 = vmatpush.msrb.mxu2 %v1546_v26  ;;  %v392_v25 = vld [vmem:[#allocation2] sm:$0xff] }
 0x21c   : > { %723 = vmatpush.msrb.mxu2 %v1545_v27 }
 0x21e   : > { %724 = vmatpush.msrb.mxu2 %v1544_v28 }
 0x21f   : > { %1537 = vmatmul.msk.f32.vlgmr.msra.gmra.mxu2 %vm280_vm0, %v1879_v4 }
 0x220   : > { %859 = vmatpush.msra.mxu2 %v1559_v29 }
 0x222   : > { %860 = vmatpush.msra.mxu2 %v1558_v30 }
 0x224   : > { %861 = vmatpush.msra.mxu2 %v1557_v31 }
 0x226   : > { %862 = vmatpush.msra.mxu2 %v1556_v32 }
 0x227   : > { %1549 = vmatmul.msk.f32.vlgmr.msrb.gmra.mxu2 %vm280_vm0, %v1879_v4 }
 0x228   : > { %997 = vmatpush.msrb.mxu2 %v1571_v33 }
 0x22a   : > { %998 = vmatpush.msrb.mxu2 %v1570_v34 }
 0x22c   : > { %999 = vmatpush.msrb.mxu2 %v1569_v35 }
 0x22e   : > { %1000 = vmatpush.msrb.mxu2 %v1568_v36 }
 0x22f   : > { %1561 = vmatmul.msk.f32.vlgmr.msra.gmra.mxu2 %vm280_vm0, %v1879_v4 }
 0x230   : > { %1135 = vmatpush.msra.mxu2 %v1583_v37 }
 0x232   : > { %1136 = vmatpush.msra.mxu2 %v1582_v38 }
 0x234   : > { %1137 = vmatpush.msra.mxu2 %v1581_v39 }
 0x236   : > { %1138 = vmatpush.msra.mxu2 %v1580_v40 }
 0x237   : > { %1573 = vmatmul.msk.f32.vlgmr.msrb.gmra.mxu2 %vm280_vm0, %v1879_v4 }
 0x238   : > { %1273 = vmatpush.msrb.mxu2 %v1595_v41 }
 0x23a   : > { %1274 = vmatpush.msrb.mxu2 %v1594_v42 }
 0x23c   : > { %1275 = vmatpush.msrb.mxu2 %v1593_v43 }
 0x23e   : > { %1276 = vmatpush.msrb.mxu2 %v1592_v44 }
 0x23f   : > { %1585 = vmatmul.msk.f32.vlgmr.msra.gmra.mxu2 %vm280_vm0, %v1879_v4 }
 0x247   : > { %1597 = vmatmul.msk.f32.vlgmr.msrb.gmra.mxu2 %vm280_vm0, %v1879_v4 }
 0x283   : > { %v350_v46 = vpop.xlane.xlu1 %349 }
 0x284   : > { %1673 = vrcp.f32 %v350_v46  ;;  %v388_v50 = vand.u32 2147483648, %v350_v46  ;;  %v386_v52 = vand.u32 2147483647, %v350_v46  ;;  %vm382_vm5 = vweird.f32 %v350_v46 }
 0x286   : > { %v389_v55 = vor.u32 1.1754944e-38, %v388_v50  ;;  %vm387_vm7 = vcmp.eq.f32.partialorder %v386_v52, 8.507059e+37 }
 0x28a   : > { %v1674_v47 = vpop.eup %1673 }
 0x28b   : > { %v378_v48 = vmul.f32 %v1674_v47, %v350_v46  ;;  %vm383_vm4 = vweird.f32 %v1674_v47 }
 0x28c   : > { %vm384_vm6 = vmor %vm382_vm5, %vm383_vm4 }
 0x28d   : > { %v379_v49 = vsub.f32 1.0, %v378_v48 }
 0x28f   : > { %v380_v51 = vmul.f32 %v1674_v47, %v379_v49 }
 0x291   : > { %v381_v53 = vadd.f32 %v1674_v47, %v380_v51 }
 0x292   : > { %v374_v54 = vpop.f32.mrf.mxu2 }
 0x293   : > { %v385_v56 = vsel %vm384_vm6, %v1674_v47, %v381_v53 }
 0x294   : > { %v390_v57 = vsel %vm387_vm7, %v389_v55, %v385_v56 }
 0x295   : > { %v391_v58 = vmul.f32 %v390_v57, %v374_v54 }
 0x297   : > { %1519 = vmatmul.msk.f32.vlgmr.msra.gmra.mxu3 %vm316_vm1, %v391_v58 }
 0x29a   : > { %v450_v60 = vpop.f32.mrf.mxu2 }
 0x29b   : > { %v451_v61 = vadd.f32 %v1661_v59, %v450_v60 }
 0x29d   : > { %454 = vrot.lane.b32.xlu2 %v451_v61, %s1772_s15 }
 0x2a2   : > { %v588_v63 = vpop.f32.mrf.mxu2 }
 0x2a3   : > { %v589_v0 = vadd.f32 %v1662_v62, %v588_v63 }
 0x2a5   : > { %592 = vrot.lane.b32.xlu2 %v589_v0, %s1772_s15  ;;  %v1650_v17 = vpack.i.bf16 %v589_v0, %v451_v61 }
 0x2aa   : > { %v726_v2 = vpop.f32.mrf.mxu2 }
 0x2ab   : > { %v727_v3 = vadd.f32 %v1663_v1, %v726_v2 }
 0x2ad   : > { %730 = vrot.lane.b32.xlu2 %v727_v3, %s1772_s15 }
 0x2b2   : > { %v864_v6 = vpop.f32.mrf.mxu2 }
 0x2b3   : > { %v865_v7 = vadd.f32 %v1664_v5, %v864_v6 }
 0x2b5   : > { %868 = vrot.lane.b32.xlu2 %v865_v7, %s1772_s15  ;;  %v1655_v18 = vpack.i.bf16 %v865_v7, %v727_v3 }
 0x2ba   : > { %v1002_v9 = vpop.f32.mrf.mxu2 }
 0x2bb   : > { %v1003_v10 = vadd.f32 %v1665_v8, %v1002_v9 }
 0x2bd   : > { %1006 = vrot.lane.b32.xlu2 %v1003_v10, %s1772_s15 }
 0x2c2   : > { %v1140_v12 = vpop.f32.mrf.mxu2 }
 0x2c3   : > { %v2019_v13 = vadd.f32 %v1666_v11, %v1140_v12 }
 0x2c5   : > { %1144 = vrot.lane.b32.xlu2 %v2019_v13, %s1772_s15 }
 0x2ca   : > { %v1278_v15 = vpop.f32.mrf.mxu2 }
 0x2cb   : > { %v1279_v16 = vadd.f32 %v1667_v14, %v1278_v15 }
 0x2cd   : > { %1282 = vrot.lane.b32.xlu2 %v1279_v16, %s1772_s15 }
 0x2d5   : > { %1651 = vrot.lane.b32.xlu2 %v1650_v17, %s1771_s14 }
 0x2dd   : > { %1656 = vrot.lane.b32.xlu2 %v1655_v18, %s1771_s14 }
 0x2e5   : > { %1041 = vrot.lane.b32.xlu2 %v1003_v10, %s1771_s14 }
 0x2ed   : > { %1317 = vrot.lane.b32.xlu2 %v1279_v16, %s1771_s14 }
 0x2f7   : > { %v455_v21 = vpop.permute.xlu2 %454 }
 0x2f8   : > { %1526 = vmatpush.xpose.msk.msrb.mxu3 %vm316_vm1, %v455_v21 }
 0x2fb   : > { %1527 = vmatmul.msk.f32.vlgmr.msrb.gmra.mxu3 %vm316_vm1, %v451_v61 }
 0x2ff   : > { %v593_v22 = vpop.permute.xlu2 %592 }
 0x300   : > { %1538 = vmatpush.xpose.msk.msra.mxu3 %vm316_vm1, %v593_v22 }
 0x303   : > { %1539 = vmatmul.msk.f32.vlgmr.msra.gmra.mxu3 %vm316_vm1, %v589_v0 }
 0x307   : > { %v731_v23 = vpop.permute.xlu2 %730 }
 0x308   : > { %1550 = vmatpush.xpose.msk.msrb.mxu3 %vm316_vm1, %v731_v23 }
 0x30b   : > { %1551 = vmatmul.msk.f32.vlgmr.msrb.gmra.mxu3 %vm316_vm1, %v727_v3 }
 0x30f   : > { %v869_v24 = vpop.permute.xlu2 %868 }
 0x310   : > { %1562 = vmatpush.xpose.msk.msra.mxu3 %vm316_vm1, %v869_v24 }
 0x313   : > { %1563 = vmatmul.msk.f32.vlgmr.msra.gmra.mxu3 %vm316_vm1, %v865_v7 }
 0x317   : > { %v1007_v4 = vpop.permute.xlu2 %1006 }
 0x318   : > { %1574 = vmatpush.xpose.msk.msrb.mxu3 %vm316_vm1, %v1007_v4  ;;  %v1529_v4 = vld [vmem:[%s2161_s3 + $0x4] sm:$0xf] }
 0x319   : > { %1530 = vmatpush.msk.msrb.mxu0 %vm397_vm3, %v1529_v4 }
 0x31a   : > { %v418_v26 = vpop.f32.mrf.mxu3 }
 0x31b   : > { %v421_v27 = vadd.f32 %v418_v26, %v392_v25  ;;  %1575 = vmatmul.msk.f32.vlgmr.msrb.gmra.mxu3 %vm316_vm1, %v1003_v10  ;;  %v1541_v25 = vld [vmem:[%s2161_s3 + $0x8] sm:$0xf] }
 0x31c   : > { %1542 = vmatpush.msk.msra.mxu0 %vm397_vm3, %v1541_v25 }
 0x31d   : > { %422 = vst.msk [vmem:[#allocation2] sm:$0xff] %vm280_vm0, %v421_v27 }
 0x31f   : > { %v1145_v28 = vpop.permute.xlu2 %1144 }
 0x320   : > { %1586 = vmatpush.xpose.msk.msra.mxu3 %vm316_vm1, %v1145_v28 }
 0x323   : > { %1587 = vmatmul.msk.f32.vlgmr.msra.gmra.mxu3 %vm316_vm1, %v2019_v13 }
 0x327   : > { %v1283_v29 = vpop.permute.xlu2 %1282 }
 0x328   : > { %1598 = vmatpush.xpose.msk.msrb.mxu3 %vm316_vm1, %v1283_v29 }
 0x32b   : > { %1599 = vmatmul.msk.f32.vlgmr.msrb.gmra.mxu3 %vm316_vm1, %v1279_v16 }
 0x32f   : > { %v1652_v30 = vpop.permute.xlu2 %1651 }
 0x330   : > { %v1654_v31 = vunpack.i.h.bf16 %v1652_v30  ;;  %v1653_v32 = vunpack.i.l.bf16 %v1652_v30 }
 0x332   : > { %510 = vmatpush.msrb.mxu1 %v1653_v32 }
 0x334   : > { %648 = vmatpush.msra.mxu1 %v1654_v31 }
 0x337   : > { %v1657_v50 = vpop.permute.xlu2 %1656 }
 0x338   : > { %v1658_v54 = vunpack.i.l.bf16 %v1657_v50  ;;  %v1659_v60 = vunpack.i.h.bf16 %v1657_v50 }
 0x33f   : > { %v1042_v3 = vpop.permute.xlu2 %1041 }
 0x347   : > { %v1318_v24 = vpop.permute.xlu2 %1317 }
 0x37e   : > { %v477_v33 = vpop.f32.mrf.mxu3 }
 0x37f   : > { %v480_v34 = vsel %vm341_vm2, %v477_v33, -inf }
 0x380   : > { %481 = vmax.xlane.f32.xlu0 %v480_v34 }
 0x386   : > { %v615_v35 = vpop.f32.mrf.mxu3 }
 0x387   : > { %v618_v36 = vsel %vm341_vm2, %v615_v35, -inf }
 0x388   : > { %619 = vmax.xlane.f32.xlu1 %v618_v36 }
 0x38e   : > { %v753_v37 = vpop.f32.mrf.mxu3 }
 0x38f   : > { %v756_v38 = vsel %vm341_vm2, %v753_v37, -inf }
 0x390   : > { %757 = vmax.xlane.f32.xlu0 %v756_v38 }
 0x396   : > { %v891_v39 = vpop.f32.mrf.mxu3 }
 0x397   : > { %v894_v40 = vsel %vm341_vm2, %v891_v39, -inf }
 0x398   : > { %895 = vmax.xlane.f32.xlu1 %v894_v40 }
 0x39e   : > { %v1029_v41 = vpop.f32.mrf.mxu3 }
 0x39f   : > { %v1032_v42 = vsel %vm341_vm2, %v1029_v41, -inf }
 0x3a0   : > { %1033 = vmax.xlane.f32.xlu0 %v1032_v42 }
 0x3a6   : > { %v1167_v43 = vpop.f32.mrf.mxu3 }
 0x3a7   : > { %v1170_v44 = vsel %vm341_vm2, %v1167_v43, -inf }
 0x3a8   : > { %1171 = vmax.xlane.f32.xlu1 %v1170_v44  ;;  %v1553_v44 = vld [vmem:[%s2161_s3 + $0xc] sm:$0xf] }
 0x3ae   : > { %v1305_v45 = vpop.f32.mrf.mxu3 }
 0x3af   : > { %v1308_v46 = vsel %vm341_vm2, %v1305_v45, -inf }
 0x3b0   : > { %1309 = vmax.xlane.f32.xlu0 %v1308_v46 }
 0x3c1   : > { %1179 = vrot.lane.b32.xlu1 %v2019_v13, %s1771_s14  ;;  %s267_s14 = sand.u32 1, %s1761_s25  }
 0x3c2   : > { %s1512_s15 = sshll.u32 %s267_s14, 3  ;;  %s1434_s16 = scalar_lea.sflag [#allocation4], %s267_s14 }
 0x3c3   : > { %s269_s28 = scalar_lea.vmem [#allocation3], %s1512_s15  ;;  %s1727_s15 = scalar_lea.hbm %s2165_s7, 16 }
 0x3c4   : > { %s1446_s9 = sshll.u32 %s269_s28, 4  ;;  %p1729_p1 = scmp.lt.s32.totalorder %s1727_s15, %s1723_s18  ;;  %s1447_s9 = int_to_ptr.vmem [resolvable:$true] %s1446_s9 }
 0x3c6   : > { %p1730_p2 = por %p1729_p1, %p1728_p0 }
 0x3c8   : > { %p1731_p3 = pnand %p1730_p2, %p1726_p13 }
 0x3f3   : > { %v482_v47 = vpop.xlane.xlu0 %481 }
 0x3f4   : > { %v483_v48 = vsub.f32 %v477_v33, %v482_v47 }
 0x3f6   : > { %v484_v49 = vmul.f32 1.442695, %v483_v48 }
 0x3f8   : > { %1675 = vpow2.f32 %v484_v49 }
 0x3fb   : > { %v620_v51 = vpop.xlane.xlu1 %619 }
 0x3fc   : > { %v621_v52 = vsub.f32 %v615_v35, %v620_v51 }
 0x3fe   : > { %v1676_v53 = vpop.eup %1675  ;;  %v622_v55 = vmul.f32 1.442695, %v621_v52 }
 0x3ff   : > { %1528 = vmatmul.msk.f32.vlgmr.msrb.gmra.mxu1 %vm341_vm2, %v1676_v53  ;;  %v486_v56 = vsel %vm341_vm2, %v1676_v53, 0.0 }
 0x400   : > { %1677 = vpow2.f32 %v622_v55  ;;  %786 = vmatpush.msrb.mxu1 %v1658_v54  ;;  %487 = vadd.xlane.f32.xlu0 %v486_v56 }
 0x403   : > { %v758_v57 = vpop.xlane.xlu0 %757 }
 0x404   : > { %v759_v58 = vsub.f32 %v753_v37, %v758_v57 }
 0x406   : > { %v1678_v59 = vpop.eup %1677  ;;  %v760_v61 = vmul.f32 1.442695, %v759_v58  ;;  %v1565_v58 = vld [vmem:[%s2161_s3 + $0x10] sm:$0xf] }
 0x407   : > { %1540 = vmatmul.msk.f32.vlgmr.msra.gmra.mxu1 %vm341_vm2, %v1678_v59  ;;  %v624_v62 = vsel %vm341_vm2, %v1678_v59, 0.0 }
 0x408   : > { %1679 = vpow2.f32 %v760_v61  ;;  %924 = vmatpush.msra.mxu1 %v1659_v60  ;;  %625 = vadd.xlane.f32.xlu2 %v624_v62 }
 0x40b   : > { %v896_v63 = vpop.xlane.xlu1 %895 }
 0x40c   : > { %v897_v0 = vsub.f32 %v891_v39, %v896_v63 }
 0x40e   : > { %v1680_v1 = vpop.eup %1679  ;;  %v898_v2 = vmul.f32 1.442695, %v897_v0 }
 0x40f   : > { %1552 = vmatmul.msk.f32.vlgmr.msrb.gmra.mxu1 %vm341_vm2, %v1680_v1  ;;  %v762_v5 = vsel %vm341_vm2, %v1680_v1, 0.0 }
 0x410   : > { %1681 = vpow2.f32 %v898_v2  ;;  %1062 = vmatpush.msrb.mxu1 %v1042_v3  ;;  %763 = vadd.xlane.f32.xlu0 %v762_v5 }
 0x413   : > { %v1034_v6 = vpop.xlane.xlu0 %1033 }
 0x414   : > { %v1035_v7 = vsub.f32 %v1029_v41, %v1034_v6 }
 0x416   : > { %v1682_v8 = vpop.eup %1681  ;;  %v1036_v9 = vmul.f32 1.442695, %v1035_v7 }
 0x417   : > { %1564 = vmatmul.msk.f32.vlgmr.msra.gmra.mxu1 %vm341_vm2, %v1682_v8  ;;  %v900_v10 = vsel %vm341_vm2, %v1682_v8, 0.0 }
 0x418   : > { %1683 = vpow2.f32 %v1036_v9  ;;  %901 = vadd.xlane.f32.xlu0 %v900_v10  ;;  %v1577_v9 = vld [vmem:[%s2161_s3 + $0x14] sm:$0xf] }
 0x41b   : > { %v1172_v11 = vpop.xlane.xlu1 %1171 }
 0x41c   : > { %v1173_v12 = vsub.f32 %v1167_v43, %v1172_v11 }
 0x41e   : > { %v1684_v13 = vpop.eup %1683  ;;  %v1174_v14 = vmul.f32 1.442695, %v1173_v12 }
 0x41f   : > { %1576 = vmatmul.msk.f32.vlgmr.msrb.gmra.mxu1 %vm341_vm2, %v1684_v13  ;;  %v1038_v15 = vsel %vm341_vm2, %v1684_v13, 0.0 }
 0x420   : > { %1685 = vpow2.f32 %v1174_v14  ;;  %1039 = vadd.xlane.f32.xlu1 %v1038_v15 }
 0x423   : > { %v1310_v16 = vpop.xlane.xlu0 %1309 }
 0x424   : > { %v1311_v17 = vsub.f32 %v1305_v45, %v1310_v16 }
 0x426   : > { %v1686_v18 = vpop.eup %1685  ;;  %v1312_v19 = vmul.f32 1.442695, %v1311_v17 }
 0x427   : > { %v1176_v20 = vsel %vm341_vm2, %v1686_v18, 0.0 }
 0x428   : > { %1687 = vpow2.f32 %v1312_v19  ;;  %1177 = vadd.xlane.f32.xlu0 %v1176_v20 }
 0x42e   : > { %v1688_v21 = vpop.eup %1687 }
 0x42f   : > { %v1314_v22 = vsel %vm341_vm2, %v1688_v21, 0.0 }
 0x430   : > { %1315 = vadd.xlane.f32.xlu0 %v1314_v22 }
 0x433   : > { %v1180_v23 = vpop.permute.xlu1 %1179 }
 0x434   : > { %1200 = vmatpush.msra.mxu1 %v1180_v23  ;;  %v1589_v23 = vld [vmem:[%s2161_s3 + $0x18] sm:$0xf] }
 0x435   : > { %1588 = vmatmul.msk.f32.vlgmr.msra.gmra.mxu1 %vm341_vm2, %v1686_v18 }
 0x436   : > { %1338 = vmatpush.msrb.mxu1 %v1318_v24 }
 0x43d   : > { %1600 = vmatmul.msk.f32.vlgmr.msrb.gmra.mxu1 %vm341_vm2, %v1688_v21 }
 0x473   : > { %v488_v26 = vpop.xlane.xlu0 %487 }
 0x474   : > { %1689 = vrcp.f32 %v488_v26  ;;  %v526_v32 = vand.u32 2147483648, %v488_v26  ;;  %v524_v34 = vand.u32 2147483647, %v488_v26  ;;  %vm520_vm9 = vweird.f32 %v488_v26 }
 0x476   : > { %v527_v37 = vor.u32 1.1754944e-38, %v526_v32  ;;  %vm525_vm11 = vcmp.eq.f32.partialorder %v524_v34, 8.507059e+37 }
 0x47a   : > { %v1690_v27 = vpop.eup %1689 }
 0x47b   : > { %v516_v28 = vmul.f32 %v1690_v27, %v488_v26  ;;  %v626_v29 = vpop.xlane.xlu2 %625  ;;  %vm521_vm8 = vweird.f32 %v1690_v27 }
 0x47c   : > { %1691 = vrcp.f32 %v626_v29  ;;  %v512_v30 = vpop.f32.mrf.mxu1  ;;  %vm522_vm10 = vmor %vm520_vm9, %vm521_vm8  ;;  %v664_v46 = vand.u32 2147483648, %v626_v29  ;;  %v662_v48 = vand.u32 2147483647, %v626_v29  ;;  %vm658_vm13 = vweird.f32 %v626_v29 }
 0x47d   : > { %v517_v31 = vsub.f32 1.0, %v516_v28 }
 0x47e   : > { %v665_v51 = vor.u32 1.1754944e-38, %v664_v46  ;;  %vm663_vm15 = vcmp.eq.f32.partialorder %v662_v48, 8.507059e+37 }
 0x47f   : > { %v518_v33 = vmul.f32 %v1690_v27, %v517_v31 }
 0x481   : > { %v519_v35 = vadd.f32 %v1690_v27, %v518_v33 }
 0x482   : > { %v1692_v36 = vpop.eup %1691 }
 0x483   : > { %v654_v38 = vmul.f32 %v1692_v36, %v626_v29  ;;  %v523_v39 = vsel %vm522_vm10, %v1690_v27, %v519_v35  ;;  %v764_v40 = vpop.xlane.xlu0 %763  ;;  %vm659_vm12 = vweird.f32 %v1692_v36 }
 0x484   : > { %v528_v41 = vsel %vm525_vm11, %v527_v37, %v523_v39  ;;  %1693 = vrcp.f32 %v764_v40  ;;  %v650_v45 = vpop.f32.mrf.mxu1  ;;  %vm660_vm14 = vmor %vm658_vm13, %vm659_vm12  ;;  %v802_v59 = vand.u32 2147483648, %v764_v40  ;;  %v800_v61 = vand.u32 2147483647, %v764_v40 }
 0x485   : > { %v655_v42 = vsub.f32 1.0, %v654_v38  ;;  %v529_v43 = vmul.f32 %v528_v41, %v512_v30  ;;  %vm796_vm4 = vweird.f32 %v764_v40 }
 0x486   : > { %v803_v1 = vor.u32 1.1754944e-38, %v802_v59  ;;  %vm801_vm6 = vcmp.eq.f32.partialorder %v800_v61, 8.507059e+37 }
 0x487   : > { %v656_v47 = vmul.f32 %v1692_v36, %v655_v42  ;;  %1531 = vmatmul.msk.f32.vlgmr.msrb.gmra.mxu0 %vm316_vm1, %v529_v43 }
 0x488   : > { %1554 = vmatpush.msk.msrb.mxu0 %vm397_vm3, %v1553_v44 }
 0x489   : > { %v657_v49 = vadd.f32 %v1692_v36, %v656_v47 }
 0x48a   : > { %v1694_v50 = vpop.eup %1693 }
 0x48b   : > { %v792_v52 = vmul.f32 %v1694_v50, %v764_v40  ;;  %v661_v53 = vsel %vm660_vm14, %v1692_v36, %v657_v49  ;;  %v902_v54 = vpop.xlane.xlu0 %901  ;;  %vm797_vm2 = vweird.f32 %v1694_v50  ;;  %v1601_v36 = vld [vmem:[%s2161_s3 + $0x1c] sm:$0xf] }
 0x48c   : > { %v666_v55 = vsel %vm663_vm15, %v665_v51, %v661_v53  ;;  %1695 = vrcp.f32 %v902_v54  ;;  %v788_v62 = vpop.f32.mrf.mxu1  ;;  %vm798_vm5 = vmor %vm796_vm4, %vm797_vm2  ;;  %v940_v10 = vand.u32 2147483648, %v902_v54  ;;  %v938_v12 = vand.u32 2147483647, %v902_v54 }
 0x48d   : > { %v793_v56 = vsub.f32 1.0, %v792_v52  ;;  %v667_v57 = vmul.f32 %v666_v55, %v650_v45  ;;  %vm934_vm8 = vweird.f32 %v902_v54 }
 0x48e   : > { %v941_v16 = vor.u32 1.1754944e-38, %v940_v10  ;;  %vm939_vm10 = vcmp.eq.f32.partialorder %v938_v12, 8.507059e+37 }
 0x48f   : > { %v794_v60 = vmul.f32 %v1694_v50, %v793_v56  ;;  %1543 = vmatmul.msk.f32.vlgmr.msra.gmra.mxu0 %vm316_vm1, %v667_v57 }
 0x490   : > { %1566 = vmatpush.msk.msra.mxu0 %vm397_vm3, %v1565_v58  ;;  %v530_v58 = vld [vmem:[#allocation2] sm:$0xff] }
 0x491   : > { %v795_v63 = vadd.f32 %v1694_v50, %v794_v60 }
 0x492   : > { %v1696_v0 = vpop.eup %1695 }
 0x493   : > { %v930_v2 = vmul.f32 %v1696_v0, %v902_v54  ;;  %v799_v3 = vsel %vm798_vm5, %v1694_v50, %v795_v63  ;;  %v1040_v5 = vpop.xlane.xlu1 %1039  ;;  %vm935_vm7 = vweird.f32 %v1696_v0 }
 0x494   : > { %v804_v6 = vsel %vm801_vm6, %v803_v1, %v799_v3  ;;  %1697 = vrcp.f32 %v1040_v5  ;;  %v926_v15 = vpop.f32.mrf.mxu1  ;;  %vm936_vm9 = vmor %vm934_vm8, %vm935_vm7  ;;  %v1078_v24 = vand.u32 2147483648, %v1040_v5  ;;  %v1076_v25 = vand.u32 2147483647, %v1040_v5 }
 0x495   : > { %v931_v7 = vsub.f32 1.0, %v930_v2  ;;  %v805_v8 = vmul.f32 %v804_v6, %v788_v62  ;;  %vm1072_vm12 = vweird.f32 %v1040_v5 }
 0x496   : > { %v1079_v28 = vor.u32 1.1754944e-38, %v1078_v24  ;;  %vm1077_vm14 = vcmp.eq.f32.partialorder %v1076_v25, 8.507059e+37 }
 0x497   : > { %v932_v11 = vmul.f32 %v1696_v0, %v931_v7  ;;  %1555 = vmatmul.msk.f32.vlgmr.msrb.gmra.mxu0 %vm316_vm1, %v805_v8 }
 0x498   : > { %1578 = vmatpush.msk.msrb.mxu0 %vm397_vm3, %v1577_v9 }
 0x499   : > { %v933_v13 = vadd.f32 %v1696_v0, %v932_v11 }
 0x49a   : > { %v1698_v14 = vpop.eup %1697 }
 0x49b   : > { %v1068_v17 = vmul.f32 %v1698_v14, %v1040_v5  ;;  %v937_v18 = vsel %vm936_vm9, %v1696_v0, %v933_v13  ;;  %v1178_v19 = vpop.xlane.xlu0 %1177  ;;  %vm1073_vm11 = vweird.f32 %v1698_v14 }
 0x49c   : > { %v942_v20 = vsel %vm939_vm10, %v941_v16, %v937_v18  ;;  %1699 = vrcp.f32 %v1178_v19  ;;  %vm1074_vm13 = vmor %vm1072_vm12, %vm1073_vm11  ;;  %v1064_v32 = vpop.f32.mrf.mxu1  ;;  %v1216_v41 = vand.u32 2147483648, %v1178_v19  ;;  %vm1210_vm2 = vweird.f32 %v1178_v19 }
 0x49d   : > { %v1069_v21 = vsub.f32 1.0, %v1068_v17  ;;  %v943_v22 = vmul.f32 %v942_v20, %v926_v15  ;;  %v1214_v43 = vand.u32 2147483647, %v1178_v19  ;;  %v1773_v20 = vmov 32.0  }
 0x49e   : > { %v1217_v46 = vor.u32 1.1754944e-38, %v1216_v41  ;;  %v1669_v41 = vld [vmem:[%s2163_s5] ss:$0 sm:$0xff] }
 0x49f   : > { %v1070_v4 = vmul.f32 %v1698_v14, %v1069_v21  ;;  %1567 = vmatmul.msk.f32.vlgmr.msra.gmra.mxu0 %vm316_vm1, %v943_v22  ;;  %vm1215_vm5 = vcmp.eq.f32.partialorder %v1214_v43, 8.507059e+37 }
 0x4a0   : > { %1590 = vmatpush.msk.msra.mxu0 %vm397_vm3, %v1589_v23 }
 0x4a1   : > { %v1071_v26 = vadd.f32 %v1698_v14, %v1070_v4 }
 0x4a2   : > { %v1700_v27 = vpop.eup %1699 }
 0x4a3   : > { %v1206_v29 = vmul.f32 %v1700_v27, %v1178_v19  ;;  %v1075_v30 = vsel %vm1074_vm13, %v1698_v14, %v1071_v26  ;;  %v1316_v31 = vpop.xlane.xlu0 %1315  ;;  %vm1211_vm15 = vweird.f32 %v1700_v27 }
 0x4a4   : > { %v1080_v33 = vsel %vm1077_vm14, %v1079_v28, %v1075_v30  ;;  %1701 = vrcp.f32 %v1316_v31  ;;  %vm1212_vm4 = vmor %vm1210_vm2, %vm1211_vm15  ;;  %v1354_v51 = vand.u32 2147483648, %v1316_v31  ;;  %v1352_v52 = vand.u32 2147483647, %v1316_v31 }
 0x4a5   : > { %v1207_v34 = vsub.f32 1.0, %v1206_v29  ;;  %v1081_v35 = vmul.f32 %v1080_v33, %v1064_v32  ;;  %1703 = vrcp.f32 %v1773_v20 }
 0x4a6   : > { %v1355_v54 = vor.u32 1.1754944e-38, %v1354_v51  ;;  %vm1353_vm8 = vcmp.eq.f32.partialorder %v1352_v52, 8.507059e+37 }
 0x4a7   : > { %1579 = vmatmul.msk.f32.vlgmr.msrb.gmra.mxu0 %vm316_vm1, %v1081_v35  ;;  %v1208_v37 = vmul.f32 %v1700_v27, %v1207_v34 }
 0x4a8   : > { %1602 = vmatpush.msk.msrb.mxu0 %vm397_vm3, %v1601_v36  ;;  %vm1348_vm3 = vweird.f32 %v1316_v31 }
 0x4a9   : > { %v1209_v40 = vadd.f32 %v1700_v27, %v1208_v37 }
 0x4aa   : > { %v1702_v38 = vpop.eup %1701 }
 0x4ab   : > { %v1344_v39 = vmul.f32 %v1702_v38, %v1316_v31  ;;  %v1213_v44 = vsel %vm1212_vm4, %v1700_v27, %v1209_v40  ;;  %vm1349_vm6 = vweird.f32 %v1702_v38  ;;  %v1704_v21 = vpop.eup %1703 }
 0x4ac   : > { %v1218_v48 = vsel %vm1215_vm5, %v1217_v46, %v1213_v44  ;;  %vm1350_vm7 = vmor %vm1348_vm3, %vm1349_vm6  ;;  %v1394_v22 = vmul.f32 32.0, %v1704_v21  ;;  %v1670_v44 = vld [vmem:[%s2164_s6] ss:$0 sm:$0xff] }
 0x4ad   : > { %v1345_v42 = vsub.f32 1.0, %v1344_v39 }
 0x4ae   : > { %v1395_v23 = vsub.f32 1.0, %v1394_v22 }
 0x4af   : > { %v1346_v45 = vmul.f32 %v1702_v38, %v1345_v42 }
 0x4b0   : > { %v1396_v24 = vmul.f32 %v1704_v21, %v1395_v23 }
 0x4b1   : > { %v1347_v50 = vadd.f32 %v1702_v38, %v1346_v45 }
 0x4b2   : > { %v1202_v47 = vpop.f32.mrf.mxu1  ;;  %v1397_v4 = vadd.f32 %v1704_v21, %v1396_v24 }
 0x4b3   : > { %v1219_v49 = vmul.f32 %v1218_v48, %v1202_v47  ;;  %v1351_v53 = vsel %vm1350_vm7, %v1702_v38, %v1347_v50 }
 0x4b4   : > { %v1356_v56 = vsel %vm1353_vm8, %v1355_v54, %v1351_v53 }
 0x4b5   : > { %1591 = vmatmul.msk.f32.vlgmr.msra.gmra.mxu0 %vm316_vm1, %v1219_v49 }
 0x4ba   : > { %v1340_v55 = vpop.f32.mrf.mxu1 }
 0x4bb   : > { %v1357_v57 = vmul.f32 %v1356_v56, %v1340_v55 }
 0x4bd   : > { %1603 = vmatmul.msk.f32.vlgmr.msrb.gmra.mxu0 %vm316_vm1, %v1357_v57  ;;  %vm1398_vm1 = vweird.f32 %v1704_v21 }
 0x4be   : > { %v1399_v25 = vsel %vm1398_vm1, %v1704_v21, %v1397_v4 }
 0x504   : > { %v556_v59 = vpop.f32.mrf.mxu0 }
 0x505   : > { %v559_v60 = vadd.f32 %v556_v59, %v530_v58 }
 0x507   : > { %560 = vst.msk [vmem:[#allocation2] sm:$0xff] %vm280_vm0, %v559_v60 }
 0x50c   : > { %v694_v62 = vpop.f32.mrf.mxu0 }
 0x50e   : > { %v668_v61 = vld [vmem:[#allocation2] sm:$0xff] }
 0x50f   : > { %v697_v63 = vadd.f32 %v694_v62, %v668_v61 }
 0x511   : > { %698 = vst.msk [vmem:[#allocation2] sm:$0xff] %vm280_vm0, %v697_v63 }
 0x514   : > { %v832_v1 = vpop.f32.mrf.mxu0 }
 0x518   : > { %v806_v0 = vld [vmem:[#allocation2] sm:$0xff] }
 0x519   : > { %v835_v2 = vadd.f32 %v832_v1, %v806_v0 }
 0x51b   : > { %836 = vst.msk [vmem:[#allocation2] sm:$0xff] %vm280_vm0, %v835_v2 }
 0x51c   : > { %v970_v5 = vpop.f32.mrf.mxu0 }
 0x522   : > { %v944_v3 = vld [vmem:[#allocation2] sm:$0xff] }
 0x523   : > { %v973_v6 = vadd.f32 %v970_v5, %v944_v3 }
 0x524   : > { %v1108_v8 = vpop.f32.mrf.mxu0 }
 0x525   : > { %974 = vst.msk [vmem:[#allocation2] sm:$0xff] %vm280_vm0, %v973_v6 }
 0x52c   : > { %v1082_v7 = vld [vmem:[#allocation2] sm:$0xff] }
 0x52d   : > { %v1111_v9 = vadd.f32 %v1108_v8, %v1082_v7 }
 0x52f   : > { %1112 = vst.msk [vmem:[#allocation2] sm:$0xff] %vm280_vm0, %v1111_v9 }
 0x532   : > { %v1246_v11 = vpop.f32.mrf.mxu0 }
 0x536   : > { %v1220_v10 = vld [vmem:[#allocation2] sm:$0xff] }
 0x537   : > { %v1249_v12 = vadd.f32 %v1246_v11, %v1220_v10 }
 0x539   : > { %1250 = vst.msk [vmem:[#allocation2] sm:$0xff] %vm280_vm0, %v1249_v12 }
 0x53a   : > { %v1384_v14 = vpop.f32.mrf.mxu0 }
 0x540   : > { %v1358_v13 = vld [vmem:[#allocation2] sm:$0xff] }
 0x541   : > { %v1387_v15 = vadd.f32 %v1384_v14, %v1358_v13 }
 0x543   : > { %1388 = vst.msk [vmem:[#allocation2] sm:$0xff] %vm280_vm0, %v1387_v15 }
 0x54a   : > { %v1389_v16 = vld [vmem:[#allocation2] sm:$0xff] }
 0x54b   : > { %v1390_v17 = vsel %vm280_vm0, %v1389_v16, 0.0  ;;  %v1401_v18 = vmul.f32 %v1389_v16, %v1389_v16 }
 0x54c   : > { %1391 = vadd.xlane.f32.xlu0 %v1390_v17 }
 0x54d   : > { %v1402_v19 = vsel %vm280_vm0, %v1401_v18, 0.0 }
 0x54e   : > { %1403 = vadd.xlane.f32.xlu2 %v1402_v19 }
 0x5bf   : > { %v1392_v26 = vpop.xlane.xlu0 %1391 }
 0x5c0   : > { %v1400_v27 = vmul.f32 %v1399_v25, %v1392_v26 }
 0x5c1   : > { %v1404_v28 = vpop.xlane.xlu2 %1403 }
 0x5c2   : > { %v1406_v29 = vmul.f32 %v1400_v27, %v1400_v27  ;;  %v1405_v30 = vmul.f32 %v1404_v28, %v1399_v25  ;;  %v1409_v40 = vsub.f32 %v1389_v16, %v1400_v27 }
 0x5c4   : > { %v1407_v31 = vsub.f32 %v1405_v30, %v1406_v29 }
 0x5c6   : > { %v1408_v32 = vmax.f32 %v1407_v31, 0.0 }
 0x5c8   : > { %v1410_v33 = vadd.f32 1e-05, %v1408_v32 }
 0x5ca   : > { %1705 = vrsqrt.f32 %v1410_v33  ;;  %vm1417_vm10 = vweird.f32 %v1410_v33 }
 0x5d0   : > { %v1706_v34 = vpop.eup %1705 }
 0x5d1   : > { %v1412_v35 = vmul.f32 %v1706_v34, %v1410_v33  ;;  %vm1418_vm9 = vweird.f32 %v1706_v34 }
 0x5d2   : > { %vm1419_vm11 = vmor %vm1417_vm10, %vm1418_vm9 }
 0x5d3   : > { %v1413_v36 = vmul.f32 %v1706_v34, %v1412_v35 }
 0x5d5   : > { %v1414_v37 = vmul.f32 0.5, %v1413_v36 }
 0x5d7   : > { %v1415_v38 = vsub.f32 1.5, %v1414_v37 }
 0x5d9   : > { %v1416_v39 = vmul.f32 %v1706_v34, %v1415_v38 }
 0x5db   : > { %v1420_v42 = vsel %vm1419_vm11, %v1706_v34, %v1416_v39 }
 0x5dc   : > { %v1421_v43 = vmul.f32 %v1420_v42, %v1409_v40 }
 0x5de   : > { %v1426_v45 = vmul.f32 %v1669_v41, %v1421_v43 }
 0x5e0   : > { %v1431_v46 = vadd.f32 %v1670_v44, %v1426_v45 }
 0x5e2   : > { %1432 = vst.msk [vmem:[%s269_s28] sm:$0xff] %vm280_vm0, %v1431_v46 }
 0x5e3   : > { %1734 = shalt.err (!%p1731_p3)
}
 0x5e4   : > { %1608 = dma.vmem_to_hbm [thread:$0]  (%p1852_p5), %s1447_s9, 128, %s1449_s13, %s1434_s16  }
 0x5e5 PF: > { %p1614_p4 = scmp.ge.s32.totalorder %s1769_s27, 2  ;;  %s1460_s14 = sand.u32 1, %s1757_s24  }
 0x5e6   : > { %s1461_s23 = scalar_lea.sflag [#allocation4], %s1460_s14 }
 0x5e7   : > { %p1611_p7 = pnand %p1614_p4, %p1856_p6 }
 0x5e9   : > { %p1612_p8 = pneg %p1611_p7 }
 0x5eb   : > { %1752 = dma.done.wait (%p1612_p8), %s1461_s23, 128  }
 0x5ec   : > { %1754 = vsyncadd (%p1612_p8), %s1461_s23, 4294967168  ;;  %p17_p9 = scmp.ge.s32.totalorder %s1839_s30, 4   ;;  %s2168_s24 = smov %s1761_s25 }
 0x5ed   : > { %s2169_s25 = smov %s1765_s26  ;;  %s2170_s26 = smov %s1850_s10 }
 0x5ee   : > { %s2171_s27 = smov %s1839_s30  ;;  %19 = sbr.rel (!%p17_p9) target bundleno = 3 (0x3), region = 104 }
 0x5f3   :  { %1467 = vsyncpa [#allocation4], 1 }
 0x5f4   :  { %1469 = vsyncpa [#allocation4 + $0x1], 1 }

</bundles_post_ra>
